<compile_context>
chip_gen: v7x
topology: tpu7x:2x2x1
jax: 0.10.0
libtpu: 0.0.40
codegen_flags: <defaults>
</compile_context>

<pallas_src>
import functools

import jax
import jax.numpy as jnp
from jax.experimental import pallas as pl
from jax.experimental.pallas import tpu as pltpu  # noqa: F401  (kept for parity)


def feat_decoder_kernel(
    z_ref, wpre_ref, bpre_ref, wtok_ref, whf_ref, bhf_ref, init_ref,
    recon_ref,
    *, n_step, hidden_dim, out_dim,
):
    f32 = jnp.float32
    H = hidden_dim
    Od = out_dim
    # Column semantics (bass=sigmoid, int=raw, rhy=sigmoid) hard-code Od == 3.
    assert Od == 3, "FeatDecoder kernel assumes output_dim == 3"

    z = z_ref[...]
    bs = z.shape[0]

    # One fused matmul produces the initial hidden state and the time-constant
    # z contribution to all three input gates:
    #   pre = [ h0 | base_r | base_z | base_n ]                (bs, 4H)
    # base_r/base_z already contain b_ir+b_hr / b_iz+b_hz (folded on host);
    # base_n contains b_in only (b_hn must stay inside the r*(...) term).
    pre = jnp.dot(z, wpre_ref[...], preferred_element_type=f32) + bpre_ref[...]
    h = pre[:, :H]
    base = pre[:, H:]                       # (bs, 3H)

    # ---- loop-invariant values, hoisted once (no CSE across unrolled iters) --
    whf = whf_ref[...]                      # (H, Od+3H)  [W_out | W_hr | W_hz | W_hn]
    bhf = bhf_ref[...]                      # (1, Od+3H)  [b_out |  0   |  0   | b_hn]
    wtok = wtok_ref[...]                    # (Od, 3H)    token rows of [W_ir|W_iz|W_in]
    # Pre-broadcast the three token weight rows for the per-step VPU FMAs.
    tok_rows = [jnp.broadcast_to(wtok[i:i + 1, :], (bs, 3 * H)) for i in range(Od)]
    # Only mask still needed: column 1 ("int") keeps the raw linear output.
    is_int = jax.lax.broadcasted_iota(jnp.int32, (bs, Od), 1) == 1

    init = jnp.broadcast_to(init_ref[...], (bs, Od))
    tok_cols = [init[:, i:i + 1] for i in range(Od)]   # three (bs, 1) scalars

    outs = []
    # Fully unrolled time loop (n_step is a compile-time constant).  The output
    # projection of step t-1 rides on the single hidden-side fused MXU push of
    # step t; the last step's projection is a narrow epilogue after the loop.
    for t in range(n_step):
        # ghf[:, :Od]  = out-projection of step t-1 (unused garbage at t == 0)
        # ghf[:, Od:]  = hidden gate pre-activations of step t (b_hn included)
        ghf = jnp.dot(h, whf, preferred_element_type=f32) + bhf

        if t > 0:
            out_feat = ghf[:, :Od]
            sig = jax.nn.sigmoid(out_feat)
            recon_t = jnp.where(is_int, out_feat, sig)   # [sig, raw, sig]
            outs.append(recon_t)
            # next autoregressive token columns (inference, no teacher forcing):
            #   [sigmoid(c0), raw(c1), float(sigmoid(c2) > 0.5)]
            tok_cols = [sig[:, 0:1], out_feat[:, 1:2],
                        (sig[:, 2:3] > 0.5).astype(f32)]

        gh = ghf[:, Od:]                                  # (bs, 3H)
        # Token-side input gates as three broadcast FMAs on the VPU — the K=3
        # matmul is dropped from the serial MXU critical path.
        gi = (base
              + tok_cols[0] * tok_rows[0]
              + tok_cols[1] * tok_rows[1]
              + tok_cols[2] * tok_rows[2])                # (bs, 3H)

        # r and z gates share one EUP sigmoid stream (contiguous 2H columns).
        rz = jax.nn.sigmoid(gi[:, :2 * H] + gh[:, :2 * H])
        r = rz[:, :H]
        zg = rz[:, H:]
        n = jnp.tanh(gi[:, 2 * H:] + r * gh[:, 2 * H:])   # b_hn rides inside gh
        h = (1.0 - zg) * n + zg * h

    # Epilogue: only the last step's output projection (Od columns of the slab),
    # not a full-width fused push.
    out_feat = jnp.dot(h, whf[:, :Od], preferred_element_type=f32) + bhf[:, :Od]
    sig = jax.nn.sigmoid(out_feat)
    outs.append(jnp.where(is_int, out_feat, sig))

    # Single lane-dense, batch-first store: (bs, n_step * out_dim).
    # TODO(synk): for much larger n_step/out_dim write each recon_t directly to
    # recon_ref[:, pl.ds(t*Od, Od)] instead, to bound vreg live ranges.
    recon_ref[...] = jnp.concatenate(outs, axis=-1)


def feat_decoder_forward(z, params, n_step):
    bs = z.shape[0]
    H = params["whr"].shape[0]
    Od = params["wout"].shape[1]
    assert Od == 3, "bass/int/rhy column semantics require output_dim == 3"
    f32 = jnp.float32

    # ---- host-side weight fusion (one-off; precomputed in a real model) ----
    # z-part of the GRU input gates, all three gates side by side.
    w_zg = jnp.concatenate(
        [params["wir_z"], params["wiz_z"], params["win_z"]], axis=1)          # (Zi, 3H)
    # z -> [h0 | base_r | base_z | base_n]
    w_pre = jnp.concatenate([params["wzh"], params["wzi"] @ w_zg], axis=1)    # (Zd, 4H)
    b_gates = jnp.concatenate(
        [params["bir"] + params["bhr"],
         params["biz"] + params["bhz"],
         params["bin"]], axis=1)                                              # (1, 3H)
    b_pre = jnp.concatenate(
        [params["bzh"], params["bzi"] @ w_zg + b_gates], axis=1)              # (1, 4H)

    # token part of the input gates (rows consumed as VPU FMAs in the kernel)
    w_tok = jnp.concatenate(
        [params["wir_t"], params["wiz_t"], params["win_t"]], axis=1)          # (Od, 3H)
    # Reordered fused hidden slab: output projection first -> out_feat at lane 0.
    w_hf = jnp.concatenate(
        [params["wout"], params["whr"], params["whz"], params["whn"]], axis=1)  # (H, Od+3H)
    b_hf = jnp.concatenate(
        [params["bout"], jnp.zeros((1, 2 * H), f32), params["bhn"]], axis=1)  # (1, Od+3H)

    args = [z, w_pre, b_pre, w_tok, w_hf, b_hf, params["init_input"]]

    def full_spec(a):
        nd = a.ndim
        return pl.BlockSpec(a.shape, lambda nd=nd: (0,) * nd)

    recon_flat = pl.pallas_call(
        functools.partial(
            feat_decoder_kernel, n_step=n_step, hidden_dim=H, out_dim=Od),
        out_shape=jax.ShapeDtypeStruct((bs, n_step * Od), jnp.float32),
        in_specs=[full_spec(a) for a in args],
        out_specs=pl.BlockSpec((bs, n_step * Od), lambda: (0, 0)),
    )(*args)
    # free reshape to PyTorch's batch_first layout (bs, n_step, output_dim)
    return recon_flat.reshape(bs, n_step, Od)


def feat_decoder_reference(z, params, n_step):
    """Pure-JAX reference of the PyTorch forward (inference=True)."""
    bs = z.shape[0]
    out_dim = params["wout"].shape[1]
    h = z @ params["wzh"] + params["bzh"]
    z_in = z @ params["wzi"] + params["bzi"]
    base_r = z_in @ params["wir_z"] + params["bir"]
    base_z = z_in @ params["wiz_z"] + params["biz"]
    base_n = z_in @ params["win_z"] + params["bin"]
    token = jnp.broadcast_to(params["init_input"], (bs, out_dim))
    outs = []
    for _ in range(n_step):
        r = jax.nn.sigmoid(token @ params["wir_t"] + base_r + h @ params["whr"] + params["bhr"])
        zg = jax.nn.sigmoid(token @ params["wiz_t"] + base_z + h @ params["whz"] + params["bhz"])
        n = jnp.tanh(token @ params["win_t"] + base_n + r * (h @ params["whn"] + params["bhn"]))
        h = (1.0 - zg) * n + zg * h
        of = h @ params["wout"] + params["bout"]
        bass = jax.nn.sigmoid(of[:, 0])
        rint = of[:, 1]
        rhy = jax.nn.sigmoid(of[:, 2])
        outs.append(jnp.stack([bass, rint, rhy], -1))
        token = jnp.stack([bass, rint, (rhy > 0.5).astype(jnp.float32)], -1)
    return jnp.stack(outs, axis=1)


def make_params(key, z_dim, hidden_dim, z_input_dim, output_dim):
    """Deterministic synthetic parameters (PyTorch-like uniform init)."""
    ks = jax.random.split(key, 24)
    H, Zd, Zi, Od = hidden_dim, z_dim, z_input_dim, output_dim

    def u(k, shape, fan_in):
        b = 1.0 / jnp.sqrt(jnp.float32(fan_in))
        return jax.random.uniform(k, shape, jnp.float32, minval=-b, maxval=b)

    p = {
        # z2dec_hid (Linear z_dim -> hidden), stored transposed (in, out)
        "wzh": u(ks[0], (Zd, H), Zd), "bzh": u(ks[1], (1, H), Zd),
        # z2dec_in (Linear z_dim -> z_input_dim)
        "wzi": u(ks[2], (Zd, Zi), Zd), "bzi": u(ks[3], (1, Zi), Zd),
        # GRU input weights, split per gate (r,z,n) and per input part
        # (token = output_dim cols, z_in = z_input_dim cols), stored (in, H)
        "wir_t": u(ks[4], (Od, H), H), "wiz_t": u(ks[5], (Od, H), H), "win_t": u(ks[6], (Od, H), H),
        "wir_z": u(ks[7], (Zi, H), H), "wiz_z": u(ks[8], (Zi, H), H), "win_z": u(ks[9], (Zi, H), H),
        "bir": u(ks[10], (1, H), H), "biz": u(ks[11], (1, H), H), "bin": u(ks[12], (1, H), H),
        # GRU hidden weights, per gate, stored (H, H)
        "whr": u(ks[13], (H, H), H), "whz": u(ks[14], (H, H), H), "whn": u(ks[15], (H, H), H),
        "bhr": u(ks[16], (1, H), H), "bhz": u(ks[17], (1, H), H), "bhn": u(ks[18], (1, H), H),
        # out (Linear hidden -> output_dim)
        "wout": u(ks[19], (H, Od), H), "bout": u(ks[20], (1, Od), H),
        # init_input ~ U[0,1)
        "init_input": jax.random.uniform(ks[21], (1, Od), jnp.float32),
    }
    return p


if __name__ == "__main__":
    # small shapes consistent with the module (scaled down from defaults)
    bs, z_dim, hidden_dim, z_input_dim, output_dim, n_step = 2, 32, 32, 16, 3, 8

    key = jax.random.PRNGKey(0)
    kp, kz = jax.random.split(key)
    params = make_params(kp, z_dim, hidden_dim, z_input_dim, output_dim)
    z = jax.random.normal(kz, (bs, z_dim), jnp.float32)

    recon = jax.block_until_ready(feat_decoder_forward(z, params, n_step))
    assert recon.shape == (bs, n_step, output_dim)

    ref = jax.block_until_ready(feat_decoder_reference(z, params, n_step))
    assert jnp.allclose(recon, ref, rtol=1e-3, atol=1e-3), (
        f"max diff {jnp.max(jnp.abs(recon - ref))}")

    print("KERNEL_OK")
</pallas_src>

<mosaic_0001>
module attributes {stable_mosaic.version = 11 : i64} {
  func.func @feat_decoder_kernel(%arg0: memref<2x32xf32, #tpu.memory_space<vmem>>, %arg1: memref<32x128xf32, #tpu.memory_space<vmem>>, %arg2: memref<1x128xf32, #tpu.memory_space<vmem>>, %arg3: memref<3x96xf32, #tpu.memory_space<vmem>>, %arg4: memref<32x99xf32, #tpu.memory_space<vmem>>, %arg5: memref<1x99xf32, #tpu.memory_space<vmem>>, %arg6: memref<1x3xf32, #tpu.memory_space<vmem>>, %arg7: memref<2x24xf32, #tpu.memory_space<vmem>>) attributes {dimension_semantics = [], scalar_prefetch = 0 : i64, scratch_operands = 0 : i64, tpu.core_type = #tpu.core_type<tc>} {
    %c0 = arith.constant 0 : index
    %c0_0 = arith.constant 0 : index
    %0 = vector.load %arg0[%c0, %c0_0] : memref<2x32xf32, #tpu.memory_space<vmem>>, vector<2x32xf32>
    %c0_1 = arith.constant 0 : index
    %c0_2 = arith.constant 0 : index
    %1 = vector.load %arg1[%c0_1, %c0_2] : memref<32x128xf32, #tpu.memory_space<vmem>>, vector<32x128xf32>
    %cst = arith.constant dense<0.000000e+00> : vector<2x128xf32>
    %2 = tpu.matmul %0, %1, %cst {dimension_numbers = #tpu.dot_dimension_numbers<[1], [0], [0], [1], [0, 0, 1, 1], [], []>} : vector<2x32xf32>, vector<32x128xf32>, vector<2x128xf32> -> vector<2x128xf32>
    %c0_3 = arith.constant 0 : index
    %c0_4 = arith.constant 0 : index
    %3 = vector.load %arg2[%c0_3, %c0_4] : memref<1x128xf32, #tpu.memory_space<vmem>>, vector<1x128xf32>
    %4 = vector.broadcast %3 : vector<1x128xf32> to vector<2x128xf32>
    %5 = arith.addf %2, %4 : vector<2x128xf32>
    %6 = vector.extract_strided_slice %5 {offsets = [0, 0], sizes = [2, 32], strides = [1, 1]} : vector<2x128xf32> to vector<2x32xf32>
    %7 = vector.extract_strided_slice %5 {offsets = [0, 32], sizes = [2, 96], strides = [1, 1]} : vector<2x128xf32> to vector<2x96xf32>
    %c0_5 = arith.constant 0 : index
    %c0_6 = arith.constant 0 : index
    %8 = vector.load %arg4[%c0_5, %c0_6] : memref<32x99xf32, #tpu.memory_space<vmem>>, vector<32x99xf32>
    %c0_7 = arith.constant 0 : index
    %c0_8 = arith.constant 0 : index
    %9 = vector.load %arg5[%c0_7, %c0_8] : memref<1x99xf32, #tpu.memory_space<vmem>>, vector<1x99xf32>
    %c0_9 = arith.constant 0 : index
    %c0_10 = arith.constant 0 : index
    %10 = vector.load %arg3[%c0_9, %c0_10] : memref<3x96xf32, #tpu.memory_space<vmem>>, vector<3x96xf32>
    %11 = vector.extract_strided_slice %10 {offsets = [0, 0], sizes = [1, 96], strides = [1, 1]} : vector<3x96xf32> to vector<1x96xf32>
    %12 = vector.shape_cast %11 : vector<1x96xf32> to vector<1x96xf32>
    %13 = vector.broadcast %12 : vector<1x96xf32> to vector<2x96xf32>
    %14 = vector.extract_strided_slice %10 {offsets = [1, 0], sizes = [1, 96], strides = [1, 1]} : vector<3x96xf32> to vector<1x96xf32>
    %15 = vector.shape_cast %14 : vector<1x96xf32> to vector<1x96xf32>
    %16 = vector.broadcast %15 : vector<1x96xf32> to vector<2x96xf32>
    %17 = vector.extract_strided_slice %10 {offsets = [2, 0], sizes = [1, 96], strides = [1, 1]} : vector<3x96xf32> to vector<1x96xf32>
    %18 = vector.shape_cast %17 : vector<1x96xf32> to vector<1x96xf32>
    %19 = vector.broadcast %18 : vector<1x96xf32> to vector<2x96xf32>
    %20 = tpu.iota {dimensions = array<i32: 1>} : vector<2x3xi32>
    %c1_i32 = arith.constant 1 : i32
    %21 = vector.broadcast %c1_i32 : i32 to vector<2x3xi32>
    %22 = arith.cmpi eq, %20, %21 : vector<2x3xi32>
    %c0_11 = arith.constant 0 : index
    %c0_12 = arith.constant 0 : index
    %23 = vector.load %arg6[%c0_11, %c0_12] : memref<1x3xf32, #tpu.memory_space<vmem>>, vector<1x3xf32>
    %24 = vector.shape_cast %23 : vector<1x3xf32> to vector<1x3xf32>
    %25 = vector.broadcast %24 : vector<1x3xf32> to vector<2x3xf32>
    %26 = vector.extract_strided_slice %25 {offsets = [0, 0], sizes = [2, 1], strides = [1, 1]} : vector<2x3xf32> to vector<2x1xf32>
    %27 = vector.extract_strided_slice %25 {offsets = [0, 1], sizes = [2, 1], strides = [1, 1]} : vector<2x3xf32> to vector<2x1xf32>
    %28 = vector.extract_strided_slice %25 {offsets = [0, 2], sizes = [2, 1], strides = [1, 1]} : vector<2x3xf32> to vector<2x1xf32>
    %cst_13 = arith.constant dense<0.000000e+00> : vector<2x99xf32>
    %29 = tpu.matmul %6, %8, %cst_13 {dimension_numbers = #tpu.dot_dimension_numbers<[1], [0], [0], [1], [0, 0, 1, 1], [], []>} : vector<2x32xf32>, vector<32x99xf32>, vector<2x99xf32> -> vector<2x99xf32>
    %30 = vector.broadcast %9 : vector<1x99xf32> to vector<2x99xf32>
    %31 = arith.addf %29, %30 : vector<2x99xf32>
    %32 = vector.extract_strided_slice %31 {offsets = [0, 3], sizes = [2, 96], strides = [1, 1]} : vector<2x99xf32> to vector<2x96xf32>
    %33 = vector.broadcast %26 : vector<2x1xf32> to vector<2x96xf32>
    %34 = arith.mulf %33, %13 : vector<2x96xf32>
    %35 = arith.addf %7, %34 : vector<2x96xf32>
    %36 = vector.broadcast %27 : vector<2x1xf32> to vector<2x96xf32>
    %37 = arith.mulf %36, %16 : vector<2x96xf32>
    %38 = arith.addf %35, %37 : vector<2x96xf32>
    %39 = vector.broadcast %28 : vector<2x1xf32> to vector<2x96xf32>
    %40 = arith.mulf %39, %19 : vector<2x96xf32>
    %41 = arith.addf %38, %40 : vector<2x96xf32>
    %42 = vector.extract_strided_slice %41 {offsets = [0, 0], sizes = [2, 64], strides = [1, 1]} : vector<2x96xf32> to vector<2x64xf32>
    %43 = vector.extract_strided_slice %32 {offsets = [0, 0], sizes = [2, 64], strides = [1, 1]} : vector<2x96xf32> to vector<2x64xf32>
    %44 = arith.addf %42, %43 : vector<2x64xf32>
    %45 = arith.negf %44 : vector<2x64xf32>
    %46 = math.exp %45 : vector<2x64xf32>
    %cst_14 = arith.constant 1.000000e+00 : f32
    %47 = vector.broadcast %cst_14 : f32 to vector<2x64xf32>
    %48 = arith.addf %47, %46 : vector<2x64xf32>
    %49 = arith.divf %47, %48 : vector<2x64xf32>
    %50 = vector.extract_strided_slice %49 {offsets = [0, 0], sizes = [2, 32], strides = [1, 1]} : vector<2x64xf32> to vector<2x32xf32>
    %51 = vector.extract_strided_slice %49 {offsets = [0, 32], sizes = [2, 32], strides = [1, 1]} : vector<2x64xf32> to vector<2x32xf32>
    %52 = vector.extract_strided_slice %41 {offsets = [0, 64], sizes = [2, 32], strides = [1, 1]} : vector<2x96xf32> to vector<2x32xf32>
    %53 = vector.extract_strided_slice %32 {offsets = [0, 64], sizes = [2, 32], strides = [1, 1]} : vector<2x96xf32> to vector<2x32xf32>
    %54 = arith.mulf %50, %53 : vector<2x32xf32>
    %55 = arith.addf %52, %54 : vector<2x32xf32>
    %56 = math.tanh %55 : vector<2x32xf32>
    %cst_15 = arith.constant 1.000000e+00 : f32
    %57 = vector.broadcast %cst_15 : f32 to vector<2x32xf32>
    %58 = arith.subf %57, %51 : vector<2x32xf32>
    %59 = arith.mulf %58, %56 : vector<2x32xf32>
    %60 = arith.mulf %51, %6 : vector<2x32xf32>
    %61 = arith.addf %59, %60 : vector<2x32xf32>
    %cst_16 = arith.constant dense<0.000000e+00> : vector<2x99xf32>
    %62 = tpu.matmul %61, %8, %cst_16 {dimension_numbers = #tpu.dot_dimension_numbers<[1], [0], [0], [1], [0, 0, 1, 1], [], []>} : vector<2x32xf32>, vector<32x99xf32>, vector<2x99xf32> -> vector<2x99xf32>
    %63 = vector.broadcast %9 : vector<1x99xf32> to vector<2x99xf32>
    %64 = arith.addf %62, %63 : vector<2x99xf32>
    %65 = vector.extract_strided_slice %64 {offsets = [0, 0], sizes = [2, 3], strides = [1, 1]} : vector<2x99xf32> to vector<2x3xf32>
    %66 = arith.negf %65 : vector<2x3xf32>
    %67 = math.exp %66 : vector<2x3xf32>
    %cst_17 = arith.constant 1.000000e+00 : f32
    %68 = vector.broadcast %cst_17 : f32 to vector<2x3xf32>
    %69 = arith.addf %68, %67 : vector<2x3xf32>
    %70 = arith.divf %68, %69 : vector<2x3xf32>
    %71 = arith.select %22, %65, %70 : vector<2x3xi1>, vector<2x3xf32>
    %72 = vector.extract_strided_slice %70 {offsets = [0, 0], sizes = [2, 1], strides = [1, 1]} : vector<2x3xf32> to vector<2x1xf32>
    %73 = vector.extract_strided_slice %65 {offsets = [0, 1], sizes = [2, 1], strides = [1, 1]} : vector<2x3xf32> to vector<2x1xf32>
    %74 = vector.extract_strided_slice %70 {offsets = [0, 2], sizes = [2, 1], strides = [1, 1]} : vector<2x3xf32> to vector<2x1xf32>
    %cst_18 = arith.constant 5.000000e-01 : f32
    %75 = vector.broadcast %cst_18 : f32 to vector<2x1xf32>
    %76 = arith.cmpf ogt, %74, %75 : vector<2x1xf32>
    %77 = arith.extui %76 : vector<2x1xi1> to vector<2x1xi32>
    %78 = arith.sitofp %77 : vector<2x1xi32> to vector<2x1xf32>
    %79 = vector.extract_strided_slice %64 {offsets = [0, 3], sizes = [2, 96], strides = [1, 1]} : vector<2x99xf32> to vector<2x96xf32>
    %80 = vector.broadcast %72 : vector<2x1xf32> to vector<2x96xf32>
    %81 = arith.mulf %80, %13 : vector<2x96xf32>
    %82 = arith.addf %7, %81 : vector<2x96xf32>
    %83 = vector.broadcast %73 : vector<2x1xf32> to vector<2x96xf32>
    %84 = arith.mulf %83, %16 : vector<2x96xf32>
    %85 = arith.addf %82, %84 : vector<2x96xf32>
    %86 = vector.broadcast %78 : vector<2x1xf32> to vector<2x96xf32>
    %87 = arith.mulf %86, %19 : vector<2x96xf32>
    %88 = arith.addf %85, %87 : vector<2x96xf32>
    %89 = vector.extract_strided_slice %88 {offsets = [0, 0], sizes = [2, 64], strides = [1, 1]} : vector<2x96xf32> to vector<2x64xf32>
    %90 = vector.extract_strided_slice %79 {offsets = [0, 0], sizes = [2, 64], strides = [1, 1]} : vector<2x96xf32> to vector<2x64xf32>
    %91 = arith.addf %89, %90 : vector<2x64xf32>
    %92 = arith.negf %91 : vector<2x64xf32>
    %93 = math.exp %92 : vector<2x64xf32>
    %cst_19 = arith.constant 1.000000e+00 : f32
    %94 = vector.broadcast %cst_19 : f32 to vector<2x64xf32>
    %95 = arith.addf %94, %93 : vector<2x64xf32>
    %96 = arith.divf %94, %95 : vector<2x64xf32>
    %97 = vector.extract_strided_slice %96 {offsets = [0, 0], sizes = [2, 32], strides = [1, 1]} : vector<2x64xf32> to vector<2x32xf32>
    %98 = vector.extract_strided_slice %96 {offsets = [0, 32], sizes = [2, 32], strides = [1, 1]} : vector<2x64xf32> to vector<2x32xf32>
    %99 = vector.extract_strided_slice %88 {offsets = [0, 64], sizes = [2, 32], strides = [1, 1]} : vector<2x96xf32> to vector<2x32xf32>
    %100 = vector.extract_strided_slice %79 {offsets = [0, 64], sizes = [2, 32], strides = [1, 1]} : vector<2x96xf32> to vector<2x32xf32>
    %101 = arith.mulf %97, %100 : vector<2x32xf32>
    %102 = arith.addf %99, %101 : vector<2x32xf32>
    %103 = math.tanh %102 : vector<2x32xf32>
    %cst_20 = arith.constant 1.000000e+00 : f32
    %104 = vector.broadcast %cst_20 : f32 to vector<2x32xf32>
    %105 = arith.subf %104, %98 : vector<2x32xf32>
    %106 = arith.mulf %105, %103 : vector<2x32xf32>
    %107 = arith.mulf %98, %61 : vector<2x32xf32>
    %108 = arith.addf %106, %107 : vector<2x32xf32>
    %cst_21 = arith.constant dense<0.000000e+00> : vector<2x99xf32>
    %109 = tpu.matmul %108, %8, %cst_21 {dimension_numbers = #tpu.dot_dimension_numbers<[1], [0], [0], [1], [0, 0, 1, 1], [], []>} : vector<2x32xf32>, vector<32x99xf32>, vector<2x99xf32> -> vector<2x99xf32>
    %110 = vector.broadcast %9 : vector<1x99xf32> to vector<2x99xf32>
    %111 = arith.addf %109, %110 : vector<2x99xf32>
    %112 = vector.extract_strided_slice %111 {offsets = [0, 0], sizes = [2, 3], strides = [1, 1]} : vector<2x99xf32> to vector<2x3xf32>
    %113 = arith.negf %112 : vector<2x3xf32>
    %114 = math.exp %113 : vector<2x3xf32>
    %cst_22 = arith.constant 1.000000e+00 : f32
    %115 = vector.broadcast %cst_22 : f32 to vector<2x3xf32>
    %116 = arith.addf %115, %114 : vector<2x3xf32>
    %117 = arith.divf %115, %116 : vector<2x3xf32>
    %118 = arith.select %22, %112, %117 : vector<2x3xi1>, vector<2x3xf32>
    %119 = vector.extract_strided_slice %117 {offsets = [0, 0], sizes = [2, 1], strides = [1, 1]} : vector<2x3xf32> to vector<2x1xf32>
    %120 = vector.extract_strided_slice %112 {offsets = [0, 1], sizes = [2, 1], strides = [1, 1]} : vector<2x3xf32> to vector<2x1xf32>
    %121 = vector.extract_strided_slice %117 {offsets = [0, 2], sizes = [2, 1], strides = [1, 1]} : vector<2x3xf32> to vector<2x1xf32>
    %cst_23 = arith.constant 5.000000e-01 : f32
    %122 = vector.broadcast %cst_23 : f32 to vector<2x1xf32>
    %123 = arith.cmpf ogt, %121, %122 : vector<2x1xf32>
    %124 = arith.extui %123 : vector<2x1xi1> to vector<2x1xi32>
    %125 = arith.sitofp %124 : vector<2x1xi32> to vector<2x1xf32>
    %126 = vector.extract_strided_slice %111 {offsets = [0, 3], sizes = [2, 96], strides = [1, 1]} : vector<2x99xf32> to vector<2x96xf32>
    %127 = vector.broadcast %119 : vector<2x1xf32> to vector<2x96xf32>
    %128 = arith.mulf %127, %13 : vector<2x96xf32>
    %129 = arith.addf %7, %128 : vector<2x96xf32>
    %130 = vector.broadcast %120 : vector<2x1xf32> to vector<2x96xf32>
    %131 = arith.mulf %130, %16 : vector<2x96xf32>
    %132 = arith.addf %129, %131 : vector<2x96xf32>
    %133 = vector.broadcast %125 : vector<2x1xf32> to vector<2x96xf32>
    %134 = arith.mulf %133, %19 : vector<2x96xf32>
    %135 = arith.addf %132, %134 : vector<2x96xf32>
    %136 = vector.extract_strided_slice %135 {offsets = [0, 0], sizes = [2, 64], strides = [1, 1]} : vector<2x96xf32> to vector<2x64xf32>
    %137 = vector.extract_strided_slice %126 {offsets = [0, 0], sizes = [2, 64], strides = [1, 1]} : vector<2x96xf32> to vector<2x64xf32>
    %138 = arith.addf %136, %137 : vector<2x64xf32>
    %139 = arith.negf %138 : vector<2x64xf32>
    %140 = math.exp %139 : vector<2x64xf32>
    %cst_24 = arith.constant 1.000000e+00 : f32
    %141 = vector.broadcast %cst_24 : f32 to vector<2x64xf32>
    %142 = arith.addf %141, %140 : vector<2x64xf32>
    %143 = arith.divf %141, %142 : vector<2x64xf32>
    %144 = vector.extract_strided_slice %143 {offsets = [0, 0], sizes = [2, 32], strides = [1, 1]} : vector<2x64xf32> to vector<2x32xf32>
    %145 = vector.extract_strided_slice %143 {offsets = [0, 32], sizes = [2, 32], strides = [1, 1]} : vector<2x64xf32> to vector<2x32xf32>
    %146 = vector.extract_strided_slice %135 {offsets = [0, 64], sizes = [2, 32], strides = [1, 1]} : vector<2x96xf32> to vector<2x32xf32>
    %147 = vector.extract_strided_slice %126 {offsets = [0, 64], sizes = [2, 32], strides = [1, 1]} : vector<2x96xf32> to vector<2x32xf32>
    %148 = arith.mulf %144, %147 : vector<2x32xf32>
    %149 = arith.addf %146, %148 : vector<2x32xf32>
    %150 = math.tanh %149 : vector<2x32xf32>
    %cst_25 = arith.constant 1.000000e+00 : f32
    %151 = vector.broadcast %cst_25 : f32 to vector<2x32xf32>
    %152 = arith.subf %151, %145 : vector<2x32xf32>
    %153 = arith.mulf %152, %150 : vector<2x32xf32>
    %154 = arith.mulf %145, %108 : vector<2x32xf32>
    %155 = arith.addf %153, %154 : vector<2x32xf32>
    %cst_26 = arith.constant dense<0.000000e+00> : vector<2x99xf32>
    %156 = tpu.matmul %155, %8, %cst_26 {dimension_numbers = #tpu.dot_dimension_numbers<[1], [0], [0], [1], [0, 0, 1, 1], [], []>} : vector<2x32xf32>, vector<32x99xf32>, vector<2x99xf32> -> vector<2x99xf32>
    %157 = vector.broadcast %9 : vector<1x99xf32> to vector<2x99xf32>
    %158 = arith.addf %156, %157 : vector<2x99xf32>
    %159 = vector.extract_strided_slice %158 {offsets = [0, 0], sizes = [2, 3], strides = [1, 1]} : vector<2x99xf32> to vector<2x3xf32>
    %160 = arith.negf %159 : vector<2x3xf32>
    %161 = math.exp %160 : vector<2x3xf32>
    %cst_27 = arith.constant 1.000000e+00 : f32
    %162 = vector.broadcast %cst_27 : f32 to vector<2x3xf32>
    %163 = arith.addf %162, %161 : vector<2x3xf32>
    %164 = arith.divf %162, %163 : vector<2x3xf32>
    %165 = arith.select %22, %159, %164 : vector<2x3xi1>, vector<2x3xf32>
    %166 = vector.extract_strided_slice %164 {offsets = [0, 0], sizes = [2, 1], strides = [1, 1]} : vector<2x3xf32> to vector<2x1xf32>
    %167 = vector.extract_strided_slice %159 {offsets = [0, 1], sizes = [2, 1], strides = [1, 1]} : vector<2x3xf32> to vector<2x1xf32>
    %168 = vector.extract_strided_slice %164 {offsets = [0, 2], sizes = [2, 1], strides = [1, 1]} : vector<2x3xf32> to vector<2x1xf32>
    %cst_28 = arith.constant 5.000000e-01 : f32
    %169 = vector.broadcast %cst_28 : f32 to vector<2x1xf32>
    %170 = arith.cmpf ogt, %168, %169 : vector<2x1xf32>
    %171 = arith.extui %170 : vector<2x1xi1> to vector<2x1xi32>
    %172 = arith.sitofp %171 : vector<2x1xi32> to vector<2x1xf32>
    %173 = vector.extract_strided_slice %158 {offsets = [0, 3], sizes = [2, 96], strides = [1, 1]} : vector<2x99xf32> to vector<2x96xf32>
    %174 = vector.broadcast %166 : vector<2x1xf32> to vector<2x96xf32>
    %175 = arith.mulf %174, %13 : vector<2x96xf32>
    %176 = arith.addf %7, %175 : vector<2x96xf32>
    %177 = vector.broadcast %167 : vector<2x1xf32> to vector<2x96xf32>
    %178 = arith.mulf %177, %16 : vector<2x96xf32>
    %179 = arith.addf %176, %178 : vector<2x96xf32>
    %180 = vector.broadcast %172 : vector<2x1xf32> to vector<2x96xf32>
    %181 = arith.mulf %180, %19 : vector<2x96xf32>
    %182 = arith.addf %179, %181 : vector<2x96xf32>
    %183 = vector.extract_strided_slice %182 {offsets = [0, 0], sizes = [2, 64], strides = [1, 1]} : vector<2x96xf32> to vector<2x64xf32>
    %184 = vector.extract_strided_slice %173 {offsets = [0, 0], sizes = [2, 64], strides = [1, 1]} : vector<2x96xf32> to vector<2x64xf32>
    %185 = arith.addf %183, %184 : vector<2x64xf32>
    %186 = arith.negf %185 : vector<2x64xf32>
    %187 = math.exp %186 : vector<2x64xf32>
    %cst_29 = arith.constant 1.000000e+00 : f32
    %188 = vector.broadcast %cst_29 : f32 to vector<2x64xf32>
    %189 = arith.addf %188, %187 : vector<2x64xf32>
    %190 = arith.divf %188, %189 : vector<2x64xf32>
    %191 = vector.extract_strided_slice %190 {offsets = [0, 0], sizes = [2, 32], strides = [1, 1]} : vector<2x64xf32> to vector<2x32xf32>
    %192 = vector.extract_strided_slice %190 {offsets = [0, 32], sizes = [2, 32], strides = [1, 1]} : vector<2x64xf32> to vector<2x32xf32>
    %193 = vector.extract_strided_slice %182 {offsets = [0, 64], sizes = [2, 32], strides = [1, 1]} : vector<2x96xf32> to vector<2x32xf32>
    %194 = vector.extract_strided_slice %173 {offsets = [0, 64], sizes = [2, 32], strides = [1, 1]} : vector<2x96xf32> to vector<2x32xf32>
    %195 = arith.mulf %191, %194 : vector<2x32xf32>
    %196 = arith.addf %193, %195 : vector<2x32xf32>
    %197 = math.tanh %196 : vector<2x32xf32>
    %cst_30 = arith.constant 1.000000e+00 : f32
    %198 = vector.broadcast %cst_30 : f32 to vector<2x32xf32>
    %199 = arith.subf %198, %192 : vector<2x32xf32>
    %200 = arith.mulf %199, %197 : vector<2x32xf32>
    %201 = arith.mulf %192, %155 : vector<2x32xf32>
    %202 = arith.addf %200, %201 : vector<2x32xf32>
    %cst_31 = arith.constant dense<0.000000e+00> : vector<2x99xf32>
    %203 = tpu.matmul %202, %8, %cst_31 {dimension_numbers = #tpu.dot_dimension_numbers<[1], [0], [0], [1], [0, 0, 1, 1], [], []>} : vector<2x32xf32>, vector<32x99xf32>, vector<2x99xf32> -> vector<2x99xf32>
    %204 = vector.broadcast %9 : vector<1x99xf32> to vector<2x99xf32>
    %205 = arith.addf %203, %204 : vector<2x99xf32>
    %206 = vector.extract_strided_slice %205 {offsets = [0, 0], sizes = [2, 3], strides = [1, 1]} : vector<2x99xf32> to vector<2x3xf32>
    %207 = arith.negf %206 : vector<2x3xf32>
    %208 = math.exp %207 : vector<2x3xf32>
    %cst_32 = arith.constant 1.000000e+00 : f32
    %209 = vector.broadcast %cst_32 : f32 to vector<2x3xf32>
    %210 = arith.addf %209, %208 : vector<2x3xf32>
    %211 = arith.divf %209, %210 : vector<2x3xf32>
    %212 = arith.select %22, %206, %211 : vector<2x3xi1>, vector<2x3xf32>
    %213 = vector.extract_strided_slice %211 {offsets = [0, 0], sizes = [2, 1], strides = [1, 1]} : vector<2x3xf32> to vector<2x1xf32>
    %214 = vector.extract_strided_slice %206 {offsets = [0, 1], sizes = [2, 1], strides = [1, 1]} : vector<2x3xf32> to vector<2x1xf32>
    %215 = vector.extract_strided_slice %211 {offsets = [0, 2], sizes = [2, 1], strides = [1, 1]} : vector<2x3xf32> to vector<2x1xf32>
    %cst_33 = arith.constant 5.000000e-01 : f32
    %216 = vector.broadcast %cst_33 : f32 to vector<2x1xf32>
    %217 = arith.cmpf ogt, %215, %216 : vector<2x1xf32>
    %218 = arith.extui %217 : vector<2x1xi1> to vector<2x1xi32>
    %219 = arith.sitofp %218 : vector<2x1xi32> to vector<2x1xf32>
    %220 = vector.extract_strided_slice %205 {offsets = [0, 3], sizes = [2, 96], strides = [1, 1]} : vector<2x99xf32> to vector<2x96xf32>
    %221 = vector.broadcast %213 : vector<2x1xf32> to vector<2x96xf32>
    %222 = arith.mulf %221, %13 : vector<2x96xf32>
    %223 = arith.addf %7, %222 : vector<2x96xf32>
    %224 = vector.broadcast %214 : vector<2x1xf32> to vector<2x96xf32>
    %225 = arith.mulf %224, %16 : vector<2x96xf32>
    %226 = arith.addf %223, %225 : vector<2x96xf32>
    %227 = vector.broadcast %219 : vector<2x1xf32> to vector<2x96xf32>
    %228 = arith.mulf %227, %19 : vector<2x96xf32>
    %229 = arith.addf %226, %228 : vector<2x96xf32>
    %230 = vector.extract_strided_slice %229 {offsets = [0, 0], sizes = [2, 64], strides = [1, 1]} : vector<2x96xf32> to vector<2x64xf32>
    %231 = vector.extract_strided_slice %220 {offsets = [0, 0], sizes = [2, 64], strides = [1, 1]} : vector<2x96xf32> to vector<2x64xf32>
    %232 = arith.addf %230, %231 : vector<2x64xf32>
    %233 = arith.negf %232 : vector<2x64xf32>
    %234 = math.exp %233 : vector<2x64xf32>
    %cst_34 = arith.constant 1.000000e+00 : f32
    %235 = vector.broadcast %cst_34 : f32 to vector<2x64xf32>
    %236 = arith.addf %235, %234 : vector<2x64xf32>
    %237 = arith.divf %235, %236 : vector<2x64xf32>
    %238 = vector.extract_strided_slice %237 {offsets = [0, 0], sizes = [2, 32], strides = [1, 1]} : vector<2x64xf32> to vector<2x32xf32>
    %239 = vector.extract_strided_slice %237 {offsets = [0, 32], sizes = [2, 32], strides = [1, 1]} : vector<2x64xf32> to vector<2x32xf32>
    %240 = vector.extract_strided_slice %229 {offsets = [0, 64], sizes = [2, 32], strides = [1, 1]} : vector<2x96xf32> to vector<2x32xf32>
    %241 = vector.extract_strided_slice %220 {offsets = [0, 64], sizes = [2, 32], strides = [1, 1]} : vector<2x96xf32> to vector<2x32xf32>
    %242 = arith.mulf %238, %241 : vector<2x32xf32>
    %243 = arith.addf %240, %242 : vector<2x32xf32>
    %244 = math.tanh %243 : vector<2x32xf32>
    %cst_35 = arith.constant 1.000000e+00 : f32
    %245 = vector.broadcast %cst_35 : f32 to vector<2x32xf32>
    %246 = arith.subf %245, %239 : vector<2x32xf32>
    %247 = arith.mulf %246, %244 : vector<2x32xf32>
    %248 = arith.mulf %239, %202 : vector<2x32xf32>
    %249 = arith.addf %247, %248 : vector<2x32xf32>
    %cst_36 = arith.constant dense<0.000000e+00> : vector<2x99xf32>
    %250 = tpu.matmul %249, %8, %cst_36 {dimension_numbers = #tpu.dot_dimension_numbers<[1], [0], [0], [1], [0, 0, 1, 1], [], []>} : vector<2x32xf32>, vector<32x99xf32>, vector<2x99xf32> -> vector<2x99xf32>
    %251 = vector.broadcast %9 : vector<1x99xf32> to vector<2x99xf32>
    %252 = arith.addf %250, %251 : vector<2x99xf32>
    %253 = vector.extract_strided_slice %252 {offsets = [0, 0], sizes = [2, 3], strides = [1, 1]} : vector<2x99xf32> to vector<2x3xf32>
    %254 = arith.negf %253 : vector<2x3xf32>
    %255 = math.exp %254 : vector<2x3xf32>
    %cst_37 = arith.constant 1.000000e+00 : f32
    %256 = vector.broadcast %cst_37 : f32 to vector<2x3xf32>
    %257 = arith.addf %256, %255 : vector<2x3xf32>
    %258 = arith.divf %256, %257 : vector<2x3xf32>
    %259 = arith.select %22, %253, %258 : vector<2x3xi1>, vector<2x3xf32>
    %260 = vector.extract_strided_slice %258 {offsets = [0, 0], sizes = [2, 1], strides = [1, 1]} : vector<2x3xf32> to vector<2x1xf32>
    %261 = vector.extract_strided_slice %253 {offsets = [0, 1], sizes = [2, 1], strides = [1, 1]} : vector<2x3xf32> to vector<2x1xf32>
    %262 = vector.extract_strided_slice %258 {offsets = [0, 2], sizes = [2, 1], strides = [1, 1]} : vector<2x3xf32> to vector<2x1xf32>
    %cst_38 = arith.constant 5.000000e-01 : f32
    %263 = vector.broadcast %cst_38 : f32 to vector<2x1xf32>
    %264 = arith.cmpf ogt, %262, %263 : vector<2x1xf32>
    %265 = arith.extui %264 : vector<2x1xi1> to vector<2x1xi32>
    %266 = arith.sitofp %265 : vector<2x1xi32> to vector<2x1xf32>
    %267 = vector.extract_strided_slice %252 {offsets = [0, 3], sizes = [2, 96], strides = [1, 1]} : vector<2x99xf32> to vector<2x96xf32>
    %268 = vector.broadcast %260 : vector<2x1xf32> to vector<2x96xf32>
    %269 = arith.mulf %268, %13 : vector<2x96xf32>
    %270 = arith.addf %7, %269 : vector<2x96xf32>
    %271 = vector.broadcast %261 : vector<2x1xf32> to vector<2x96xf32>
    %272 = arith.mulf %271, %16 : vector<2x96xf32>
    %273 = arith.addf %270, %272 : vector<2x96xf32>
    %274 = vector.broadcast %266 : vector<2x1xf32> to vector<2x96xf32>
    %275 = arith.mulf %274, %19 : vector<2x96xf32>
    %276 = arith.addf %273, %275 : vector<2x96xf32>
    %277 = vector.extract_strided_slice %276 {offsets = [0, 0], sizes = [2, 64], strides = [1, 1]} : vector<2x96xf32> to vector<2x64xf32>
    %278 = vector.extract_strided_slice %267 {offsets = [0, 0], sizes = [2, 64], strides = [1, 1]} : vector<2x96xf32> to vector<2x64xf32>
    %279 = arith.addf %277, %278 : vector<2x64xf32>
    %280 = arith.negf %279 : vector<2x64xf32>
    %281 = math.exp %280 : vector<2x64xf32>
    %cst_39 = arith.constant 1.000000e+00 : f32
    %282 = vector.broadcast %cst_39 : f32 to vector<2x64xf32>
    %283 = arith.addf %282, %281 : vector<2x64xf32>
    %284 = arith.divf %282, %283 : vector<2x64xf32>
    %285 = vector.extract_strided_slice %284 {offsets = [0, 0], sizes = [2, 32], strides = [1, 1]} : vector<2x64xf32> to vector<2x32xf32>
    %286 = vector.extract_strided_slice %284 {offsets = [0, 32], sizes = [2, 32], strides = [1, 1]} : vector<2x64xf32> to vector<2x32xf32>
    %287 = vector.extract_strided_slice %276 {offsets = [0, 64], sizes = [2, 32], strides = [1, 1]} : vector<2x96xf32> to vector<2x32xf32>
    %288 = vector.extract_strided_slice %267 {offsets = [0, 64], sizes = [2, 32], strides = [1, 1]} : vector<2x96xf32> to vector<2x32xf32>
    %289 = arith.mulf %285, %288 : vector<2x32xf32>
    %290 = arith.addf %287, %289 : vector<2x32xf32>
    %291 = math.tanh %290 : vector<2x32xf32>
    %cst_40 = arith.constant 1.000000e+00 : f32
    %292 = vector.broadcast %cst_40 : f32 to vector<2x32xf32>
    %293 = arith.subf %292, %286 : vector<2x32xf32>
    %294 = arith.mulf %293, %291 : vector<2x32xf32>
    %295 = arith.mulf %286, %249 : vector<2x32xf32>
    %296 = arith.addf %294, %295 : vector<2x32xf32>
    %cst_41 = arith.constant dense<0.000000e+00> : vector<2x99xf32>
    %297 = tpu.matmul %296, %8, %cst_41 {dimension_numbers = #tpu.dot_dimension_numbers<[1], [0], [0], [1], [0, 0, 1, 1], [], []>} : vector<2x32xf32>, vector<32x99xf32>, vector<2x99xf32> -> vector<2x99xf32>
    %298 = vector.broadcast %9 : vector<1x99xf32> to vector<2x99xf32>
    %299 = arith.addf %297, %298 : vector<2x99xf32>
    %300 = vector.extract_strided_slice %299 {offsets = [0, 0], sizes = [2, 3], strides = [1, 1]} : vector<2x99xf32> to vector<2x3xf32>
    %301 = arith.negf %300 : vector<2x3xf32>
    %302 = math.exp %301 : vector<2x3xf32>
    %cst_42 = arith.constant 1.000000e+00 : f32
    %303 = vector.broadcast %cst_42 : f32 to vector<2x3xf32>
    %304 = arith.addf %303, %302 : vector<2x3xf32>
    %305 = arith.divf %303, %304 : vector<2x3xf32>
    %306 = arith.select %22, %300, %305 : vector<2x3xi1>, vector<2x3xf32>
    %307 = vector.extract_strided_slice %305 {offsets = [0, 0], sizes = [2, 1], strides = [1, 1]} : vector<2x3xf32> to vector<2x1xf32>
    %308 = vector.extract_strided_slice %300 {offsets = [0, 1], sizes = [2, 1], strides = [1, 1]} : vector<2x3xf32> to vector<2x1xf32>
    %309 = vector.extract_strided_slice %305 {offsets = [0, 2], sizes = [2, 1], strides = [1, 1]} : vector<2x3xf32> to vector<2x1xf32>
    %cst_43 = arith.constant 5.000000e-01 : f32
    %310 = vector.broadcast %cst_43 : f32 to vector<2x1xf32>
    %311 = arith.cmpf ogt, %309, %310 : vector<2x1xf32>
    %312 = arith.extui %311 : vector<2x1xi1> to vector<2x1xi32>
    %313 = arith.sitofp %312 : vector<2x1xi32> to vector<2x1xf32>
    %314 = vector.extract_strided_slice %299 {offsets = [0, 3], sizes = [2, 96], strides = [1, 1]} : vector<2x99xf32> to vector<2x96xf32>
    %315 = vector.broadcast %307 : vector<2x1xf32> to vector<2x96xf32>
    %316 = arith.mulf %315, %13 : vector<2x96xf32>
    %317 = arith.addf %7, %316 : vector<2x96xf32>
    %318 = vector.broadcast %308 : vector<2x1xf32> to vector<2x96xf32>
    %319 = arith.mulf %318, %16 : vector<2x96xf32>
    %320 = arith.addf %317, %319 : vector<2x96xf32>
    %321 = vector.broadcast %313 : vector<2x1xf32> to vector<2x96xf32>
    %322 = arith.mulf %321, %19 : vector<2x96xf32>
    %323 = arith.addf %320, %322 : vector<2x96xf32>
    %324 = vector.extract_strided_slice %323 {offsets = [0, 0], sizes = [2, 64], strides = [1, 1]} : vector<2x96xf32> to vector<2x64xf32>
    %325 = vector.extract_strided_slice %314 {offsets = [0, 0], sizes = [2, 64], strides = [1, 1]} : vector<2x96xf32> to vector<2x64xf32>
    %326 = arith.addf %324, %325 : vector<2x64xf32>
    %327 = arith.negf %326 : vector<2x64xf32>
    %328 = math.exp %327 : vector<2x64xf32>
    %cst_44 = arith.constant 1.000000e+00 : f32
    %329 = vector.broadcast %cst_44 : f32 to vector<2x64xf32>
    %330 = arith.addf %329, %328 : vector<2x64xf32>
    %331 = arith.divf %329, %330 : vector<2x64xf32>
    %332 = vector.extract_strided_slice %331 {offsets = [0, 0], sizes = [2, 32], strides = [1, 1]} : vector<2x64xf32> to vector<2x32xf32>
    %333 = vector.extract_strided_slice %331 {offsets = [0, 32], sizes = [2, 32], strides = [1, 1]} : vector<2x64xf32> to vector<2x32xf32>
    %334 = vector.extract_strided_slice %323 {offsets = [0, 64], sizes = [2, 32], strides = [1, 1]} : vector<2x96xf32> to vector<2x32xf32>
    %335 = vector.extract_strided_slice %314 {offsets = [0, 64], sizes = [2, 32], strides = [1, 1]} : vector<2x96xf32> to vector<2x32xf32>
    %336 = arith.mulf %332, %335 : vector<2x32xf32>
    %337 = arith.addf %334, %336 : vector<2x32xf32>
    %338 = math.tanh %337 : vector<2x32xf32>
    %cst_45 = arith.constant 1.000000e+00 : f32
    %339 = vector.broadcast %cst_45 : f32 to vector<2x32xf32>
    %340 = arith.subf %339, %333 : vector<2x32xf32>
    %341 = arith.mulf %340, %338 : vector<2x32xf32>
    %342 = arith.mulf %333, %296 : vector<2x32xf32>
    %343 = arith.addf %341, %342 : vector<2x32xf32>
    %cst_46 = arith.constant dense<0.000000e+00> : vector<2x99xf32>
    %344 = tpu.matmul %343, %8, %cst_46 {dimension_numbers = #tpu.dot_dimension_numbers<[1], [0], [0], [1], [0, 0, 1, 1], [], []>} : vector<2x32xf32>, vector<32x99xf32>, vector<2x99xf32> -> vector<2x99xf32>
    %345 = vector.broadcast %9 : vector<1x99xf32> to vector<2x99xf32>
    %346 = arith.addf %344, %345 : vector<2x99xf32>
    %347 = vector.extract_strided_slice %346 {offsets = [0, 0], sizes = [2, 3], strides = [1, 1]} : vector<2x99xf32> to vector<2x3xf32>
    %348 = arith.negf %347 : vector<2x3xf32>
    %349 = math.exp %348 : vector<2x3xf32>
    %cst_47 = arith.constant 1.000000e+00 : f32
    %350 = vector.broadcast %cst_47 : f32 to vector<2x3xf32>
    %351 = arith.addf %350, %349 : vector<2x3xf32>
    %352 = arith.divf %350, %351 : vector<2x3xf32>
    %353 = arith.select %22, %347, %352 : vector<2x3xi1>, vector<2x3xf32>
    %354 = vector.extract_strided_slice %352 {offsets = [0, 0], sizes = [2, 1], strides = [1, 1]} : vector<2x3xf32> to vector<2x1xf32>
    %355 = vector.extract_strided_slice %347 {offsets = [0, 1], sizes = [2, 1], strides = [1, 1]} : vector<2x3xf32> to vector<2x1xf32>
    %356 = vector.extract_strided_slice %352 {offsets = [0, 2], sizes = [2, 1], strides = [1, 1]} : vector<2x3xf32> to vector<2x1xf32>
    %cst_48 = arith.constant 5.000000e-01 : f32
    %357 = vector.broadcast %cst_48 : f32 to vector<2x1xf32>
    %358 = arith.cmpf ogt, %356, %357 : vector<2x1xf32>
    %359 = arith.extui %358 : vector<2x1xi1> to vector<2x1xi32>
    %360 = arith.sitofp %359 : vector<2x1xi32> to vector<2x1xf32>
    %361 = vector.extract_strided_slice %346 {offsets = [0, 3], sizes = [2, 96], strides = [1, 1]} : vector<2x99xf32> to vector<2x96xf32>
    %362 = vector.broadcast %354 : vector<2x1xf32> to vector<2x96xf32>
    %363 = arith.mulf %362, %13 : vector<2x96xf32>
    %364 = arith.addf %7, %363 : vector<2x96xf32>
    %365 = vector.broadcast %355 : vector<2x1xf32> to vector<2x96xf32>
    %366 = arith.mulf %365, %16 : vector<2x96xf32>
    %367 = arith.addf %364, %366 : vector<2x96xf32>
    %368 = vector.broadcast %360 : vector<2x1xf32> to vector<2x96xf32>
    %369 = arith.mulf %368, %19 : vector<2x96xf32>
    %370 = arith.addf %367, %369 : vector<2x96xf32>
    %371 = vector.extract_strided_slice %370 {offsets = [0, 0], sizes = [2, 64], strides = [1, 1]} : vector<2x96xf32> to vector<2x64xf32>
    %372 = vector.extract_strided_slice %361 {offsets = [0, 0], sizes = [2, 64], strides = [1, 1]} : vector<2x96xf32> to vector<2x64xf32>
    %373 = arith.addf %371, %372 : vector<2x64xf32>
    %374 = arith.negf %373 : vector<2x64xf32>
    %375 = math.exp %374 : vector<2x64xf32>
    %cst_49 = arith.constant 1.000000e+00 : f32
    %376 = vector.broadcast %cst_49 : f32 to vector<2x64xf32>
    %377 = arith.addf %376, %375 : vector<2x64xf32>
    %378 = arith.divf %376, %377 : vector<2x64xf32>
    %379 = vector.extract_strided_slice %378 {offsets = [0, 0], sizes = [2, 32], strides = [1, 1]} : vector<2x64xf32> to vector<2x32xf32>
    %380 = vector.extract_strided_slice %378 {offsets = [0, 32], sizes = [2, 32], strides = [1, 1]} : vector<2x64xf32> to vector<2x32xf32>
    %381 = vector.extract_strided_slice %370 {offsets = [0, 64], sizes = [2, 32], strides = [1, 1]} : vector<2x96xf32> to vector<2x32xf32>
    %382 = vector.extract_strided_slice %361 {offsets = [0, 64], sizes = [2, 32], strides = [1, 1]} : vector<2x96xf32> to vector<2x32xf32>
    %383 = arith.mulf %379, %382 : vector<2x32xf32>
    %384 = arith.addf %381, %383 : vector<2x32xf32>
    %385 = math.tanh %384 : vector<2x32xf32>
    %cst_50 = arith.constant 1.000000e+00 : f32
    %386 = vector.broadcast %cst_50 : f32 to vector<2x32xf32>
    %387 = arith.subf %386, %380 : vector<2x32xf32>
    %388 = arith.mulf %387, %385 : vector<2x32xf32>
    %389 = arith.mulf %380, %343 : vector<2x32xf32>
    %390 = arith.addf %388, %389 : vector<2x32xf32>
    %391 = vector.extract_strided_slice %8 {offsets = [0, 0], sizes = [32, 3], strides = [1, 1]} : vector<32x99xf32> to vector<32x3xf32>
    %cst_51 = arith.constant dense<0.000000e+00> : vector<2x3xf32>
    %392 = tpu.matmul %390, %391, %cst_51 {dimension_numbers = #tpu.dot_dimension_numbers<[1], [0], [0], [1], [0, 0, 1, 1], [], []>} : vector<2x32xf32>, vector<32x3xf32>, vector<2x3xf32> -> vector<2x3xf32>
    %393 = vector.extract_strided_slice %9 {offsets = [0, 0], sizes = [1, 3], strides = [1, 1]} : vector<1x99xf32> to vector<1x3xf32>
    %394 = vector.broadcast %393 : vector<1x3xf32> to vector<2x3xf32>
    %395 = arith.addf %392, %394 : vector<2x3xf32>
    %396 = arith.negf %395 : vector<2x3xf32>
    %397 = math.exp %396 : vector<2x3xf32>
    %cst_52 = arith.constant 1.000000e+00 : f32
    %398 = vector.broadcast %cst_52 : f32 to vector<2x3xf32>
    %399 = arith.addf %398, %397 : vector<2x3xf32>
    %400 = arith.divf %398, %399 : vector<2x3xf32>
    %401 = arith.select %22, %395, %400 : vector<2x3xi1>, vector<2x3xf32>
    %402 = tpu.concatenate %71, %118, %165, %212, %259, %306, %353, %401 in 1 : vector<2x3xf32>, vector<2x3xf32>, vector<2x3xf32>, vector<2x3xf32>, vector<2x3xf32>, vector<2x3xf32>, vector<2x3xf32>, vector<2x3xf32> -> vector<2x24xf32>
    %c0_53 = arith.constant 0 : index
    %c0_54 = arith.constant 0 : index
    %403 = vector.load %arg7[%c0_53, %c0_54] : memref<2x24xf32, #tpu.memory_space<vmem>>, vector<2x24xf32>
    tpu.vector_store %arg7[%c0_53, %c0_54], %402 {strides = array<i32>} : memref<2x24xf32, #tpu.memory_space<vmem>>, vector<2x24xf32>,
    return
  }
}

</mosaic_0001>

<bundles_post_ra>
// kernel: tpu_custom_call.1
= control target key start
LH: loop header
LB: loop body
LE: loop exit
PB: predicated region body
PF: predicated region fallthrough
CT: control target
= control target key end

     0   :  { %12 = vsyncpa [#allocation3], 0  ;;  %s2399_s0 = inlined_call_operand.hbm [shape: f32[2,32], index: 0, kind: input, shape index: {}]   ;;  %s2400_s1 = inlined_call_operand.hbm [shape: f32[32,128], index: 1, kind: input, shape index: {}]   ;;  %s2401_s2 = inlined_call_operand.vmem [shape: f32[1,128], index: 2, kind: input, shape index: {}]   ;;  %s2402_s3 = inlined_call_operand.vmem [shape: f32[3,96], index: 3, kind: input, shape index: {}]   ;;  %s2403_s4 = inlined_call_operand.hbm [shape: f32[32,99], index: 4, kind: input, shape index: {}]   ;;  %s2404_s5 = inlined_call_operand.vmem [shape: f32[1,99], index: 5, kind: input, shape index: {}]   ;;  %s2405_s6 = inlined_call_operand.vmem [shape: f32[1,3], index: 6, kind: input, shape index: {}]   ;;  %s2406_s7 = inlined_call_operand.hbm [shape: f32[2,24], index: 7, kind: output, shape index: {}]  }
   0x1   :  { %13 = vsyncpa [#allocation6], 0 }
   0x2   :  { %14 = vsyncpa [#allocation4], 0  ;;  %s1956_s24 = smov [#allocation5]   ;;  %s1862_s28 = scalar_lea.hbm %s2400_s1, 512 }
   0x3   :  { %s30_s25 = sshll.u32 %s1956_s24, 4  ;;  %p1863_p0 = scmp.ne.s32.totalorder %s2400_s1, %s1862_s28  ;;  %s31_s25 = int_to_ptr.vmem [resolvable:$true] %s30_s25 }
   0x4   :  { %p1866_p1 = scmp.lt.u32.totalorder %s1862_s28, %s2400_s1 }
   0x6   :  { %p1868_p2 = pnand %p1866_p1, %p1863_p0 }
   0x8   :  { %1871 = shalt.err (!%p1868_p2)
}
   0x9   :  { %s1872_s10 = scalar_lea.vmem %s31_s25, 512  ;;  %p1877_p4 = scmp.lt.s32.totalorder %s31_s25, %s31_s25 }
   0xa   :  { %p1873_p3 = scmp.ne.s32.totalorder %s31_s25, %s1872_s10  ;;  %p1878_p5 = scmp.lt.s32.totalorder %s1872_s10, %s1872_s10 }
   0xc   :  { %p1879_p6 = por %p1878_p5, %p1877_p4 }
   0xe   :  { %p1880_p7 = pnand %p1879_p6, %p1873_p3 }
  0x10   :  { %1883 = shalt.err (!%p1880_p7)
}
  0x11   :  { %s1957_s11 = smov 128   ;;  %s1958_s12 = smov 8  }
  0x12   :  { %36 = dma.hbm_to_vmem [thread:$0]  %s2400_s1, 512, %s31_s25, [#allocation6], %s1957_s11, %s1957_s11, %s1958_s12  }
  0x13   :  { %s1959_s15 = smov [#allocation2]   ;;  %s1960_s17 = smov [#allocation7]  }
  0x14   :  { %s21_s16 = sshll.u32 %s1959_s15, 4  ;;  %s46_s18 = sshll.u32 %s1960_s17, 4  ;;  %s22_s16 = int_to_ptr.vmem [resolvable:$true] %s21_s16  ;;  %s47_s18 = int_to_ptr.vmem [resolvable:$true] %s46_s18 }
  0x15   :  { %s1884_s21 = scalar_lea.hbm %s2399_s0, 32 }
  0x16   :  { %p1885_p8 = scmp.ne.s32.totalorder %s2399_s0, %s1884_s21  ;;  %p1888_p9 = scmp.lt.u32.totalorder %s1884_s21, %s2399_s0 }
  0x18   :  { %p1890_p10 = pnand %p1888_p9, %p1885_p8 }
  0x1a   :  { %1893 = shalt.err (!%p1890_p10)
}
  0x1b   :  { %s1894_s1 = scalar_lea.vmem %s22_s16, 32  ;;  %p1899_p12 = scmp.lt.s32.totalorder %s22_s16, %s22_s16 }
  0x1c   :  { %p1895_p11 = scmp.ne.s32.totalorder %s22_s16, %s1894_s1  ;;  %p1900_p13 = scmp.lt.s32.totalorder %s1894_s1, %s1894_s1 }
  0x1e   :  { %p1901_p0 = por %p1900_p13, %p1899_p12 }
  0x20   :  { %p1902_p1 = pnand %p1901_p0, %p1895_p11 }
  0x22   :  { %1905 = shalt.err (!%p1902_p1)
}
  0x23   :  { %24 = dma.hbm_to_vmem [thread:$0]  %s2399_s0, 32, %s22_s16, [#allocation3]  }
  0x24   :  { %s1906_s30 = scalar_lea.hbm %s2403_s4, 512 }
  0x25   :  { %p1907_p2 = scmp.ne.s32.totalorder %s2403_s4, %s1906_s30  ;;  %p1910_p3 = scmp.lt.u32.totalorder %s1906_s30, %s2403_s4 }
  0x27   :  { %p1912_p4 = pnand %p1910_p3, %p1907_p2 }
  0x29   :  { %1915 = shalt.err (!%p1912_p4)
}
  0x2a   :  { %s1916_s14 = scalar_lea.vmem %s47_s18, 512  ;;  %p1921_p6 = scmp.lt.s32.totalorder %s47_s18, %s47_s18 }
  0x2b   :  { %p1917_p5 = scmp.ne.s32.totalorder %s47_s18, %s1916_s14  ;;  %p1922_p7 = scmp.lt.s32.totalorder %s1916_s14, %s1916_s14 }
  0x2d   :  { %p1923_p8 = por %p1922_p7, %p1921_p6 }
  0x2f   :  { %p1924_p9 = pnand %p1923_p8, %p1917_p5 }
  0x31   :  { %1927 = shalt.err (!%p1924_p9)
}
  0x32   :  { %52 = dma.hbm_to_vmem [thread:$0]  %s2403_s4, 512, %s47_s18, [#allocation6], %s1957_s11, %s1957_s11, %s1958_s12  }
  0x33   :  { %1950 = dma.done.wait [#allocation3], 32  }
  0x34   :  { %1951 = vsyncadd [#allocation3], 4294967264 }
  0x35   :  { %1952 = dma.done.wait [#allocation6], 1024  }
  0x36   :  { %1953 = vsyncadd [#allocation6], 4294966272  ;;  %v1961_v0 = vmov 0   ;;  %v1962_v1 = vmov 0.0|0.0   ;;  %v1963_v2 = vmov 2   ;;  %vm1964_vm0 = vmmov 0  }
  0x37   :  { %1764 = vset.pattern.permute.xlu0 %v1961_v0  ;;  %1680 = vmatprep.subr.bf16.mxu0 %v1962_v1  ;;  %v1965_v3 = vmov 0.0   ;;  %v1488_v4 = vld [vmem:[%s2405_s6] ss:$0 sm:$0xff]  ;;  %v67_v5 = vld [vmem:[#allocation5] sm:$0xff]  ;;  %v68_v6 = vld [vmem:[#allocation5 + $0x8] sm:$0xff]  ;;  %v1966_v11 = vmov 1   ;;  %v158_v19 = vlaneseq }
  0x38   :  { %1766 = vset.pattern.permute.xlu1 %v1963_v2  ;;  %1578 = vmatprep.mubr.msk.f32.mxu0 %vm1964_vm0, %v1965_v3  ;;  %v1681_v7 = vpack.c.bf16 %v68_v6, %v67_v5  ;;  %v69_v8 = vld [vmem:[#allocation5 + $0x10] sm:$0xff]  ;;  %v70_v9 = vld [vmem:[#allocation5 + $0x18] sm:$0xff]  ;;  %vm78_vm1 = vcmask 261120   ;;  %v152_v13 = vld [vmem:[#allocation7] sm:$0xff]  ;;  %s1967_s16 = smov 32   ;;  %s1968_s19 = smov 93  }
  0x39   :  { %1686 = vmatprep.subr.bf16.mxu1 %v1962_v1  ;;  %1589 = vmatprep.mubr.msk.f32.mxu1 %vm1964_vm0, %v1965_v3  ;;  %v1684_v10 = vpack.c.bf16 %v70_v9, %v69_v8  ;;  %v66_v12 = vld [vmem:[#allocation2] sm:$0x3]  ;;  %v153_v14 = vld [vmem:[#allocation7 + $0x8] sm:$0xff]  ;;  %v154_v16 = vld [vmem:[#allocation7 + $0x10] sm:$0xff]  ;;  %v159_v20 = vshrl.u32 %v158_v19, 7  ;;  %s1969_s20 = smov 29  }
  0x3a   :  { %259 = vperm.xlu0 %1764, %v1488_v4   ;;  %279 = vperm.xlu1 %1766, %v1488_v4   ;;  %v2077_v15 = vpack.c.bf16 %v153_v14, %v152_v13  ;;  %v155_v17 = vld [vmem:[#allocation7 + $0x18] sm:$0xff]  ;;  %v1484_v34 = vld [vmem:[%s2401_s2] ss:$0 sm:$0xff]  ;;  %s1971_s21 = smov 96   ;;  %s1972_s22 = smov 3   ;;  %vm1452_vm10 = vcmask 23552  }
  0x3b   :  { %1682 = vmatpush3.bf16.msra.mxu0 %v1681_v7  ;;  %v2086_v18 = vpack.c.bf16 %v155_v17, %v154_v16  ;;  %v160_v21 = vsub.s32 0, %v159_v20  ;;  %v168_v22 = vsub.s32 2, %v159_v20  ;;  %v157_v23 = vld [vmem:[%s2402_s3] sm:$0x7]  ;;  %v164_v26 = vsub.s32 1, %v159_v20  ;;  %s1973_s23 = smov 9  }
  0x3c   :  { %1683 = vmatprep.subr.bf16.mxu0 %v1962_v1  ;;  %1688 = vmatpush3.bf16.msra.mxu1 %v2077_v15  ;;  %v2124_v38 = vld [vmem:[%s2404_s5] ss:$0 sm:$0xff]  ;;  %s1970_s5 = smov 64   ;;  %s1974_s24 = smov 15   ;;  %vm1454_vm11 = vcmask 48128   ;;  %vm1456_vm12 = vcmask 72704  }
  0x3d   :  { %1689 = vmatprep.subr.bf16.mxu1 %v1962_v1  ;;  %v2096_v24 = vrot.slane %v157_v23, %v160_v21  ;;  %v2098_v25 = vrot.slane %v157_v23, %v168_v22  ;;  %v2102_v31 = vrot.slane %v157_v23, %v164_v26  ;;  %s1975_s26 = smov 6   ;;  %s1976_s1 = smov 12   ;;  %vm1458_vm13 = vcmask 97280  }
  0x3e   :  { %1765 = vset.pattern.permute.xlu0 %v1966_v11  ;;  %1767 = vset.pattern.permute.xlu1 %v1961_v0  ;;  %s1977_s25 = smov 18   ;;  %s1978_s27 = smov 21   ;;  %vm1460_vm14 = vcmask 121856   ;;  %vm1462_vm15 = vcmask 146432  }
  0x3f   :  { %269 = vperm.xlu0 %1765, %v1488_v4   ;;  %1685 = vmatpush3.bf16.msra.mxu0 %v1684_v10  ;;  %s1979_s28 = smov [#allocation8]  }
  0x40   :  { %1692 = vmatprep.subr.bf16.mxu0 %v1962_v1  ;;  %1691 = vmatpush3.bf16.msra.mxu1 %v2086_v18  ;;  %s1474_s29 = sshll.u32 %s1979_s28, 4  ;;  %s1475_s29 = int_to_ptr.vmem [resolvable:$true] %s1474_s29 }
  0x41   :  { %1698 = vmatprep.subr.bf16.mxu1 %v1962_v1  ;;  %s1928_s30 = scalar_lea.vmem %s1475_s29, 32  ;;  %p1933_p11 = scmp.lt.s32.totalorder %s1475_s29, %s1475_s29 }
  0x42   :  { %1579 = vmatmul.mubr.msk.f32.vlgmr.msra.gmra.mrb[0].mxu0 %vm78_vm1, %v66_v12  ;;  %p1929_p10 = scmp.ne.s32.totalorder %s1475_s29, %s1928_s30  ;;  %p1934_p12 = scmp.lt.s32.totalorder %s1928_s30, %s1928_s30 }
  0x43   :  { %1694 = vmatpush3.bf16.msra.mxu0 %v2077_v15  ;;  %1600 = vmatprep.mubr.msk.f32.mxu0 %vm1964_vm0, %v1965_v3 }
  0x44   :  { %1695 = vmatprep.subr.bf16.mxu0 %v1962_v1  ;;  %p1935_p13 = por %p1934_p12, %p1933_p11 }
  0x46   :  { %p1936_p0 = pnand %p1935_p13, %p1929_p10 }
  0x47   :  { %1697 = vmatpush3.bf16.msra.mxu0 %v2086_v18 }
  0x48   :  { %1704 = vmatprep.subr.bf16.mxu0 %v1962_v1 }
  0xb9   :  { %v260_v27 = vpop.permute.xlu0 %259  ;;  %v280_v28 = vpop.permute.xlu1 %279 }
  0xba   :  { %v262_v29 = vmul.f32 %v260_v27, %v2096_v24  ;;  %v282_v30 = vmul.f32 %v280_v28, %v2098_v25 }
  0xbc   :  { %264 = vrot.lane.b32.xlu1 %v262_v29, %s1967_s16  ;;  %284 = vrot.lane.b32.xlu0 %v282_v30, %s1967_s16 }
  0xbe   :  { %v270_v32 = vpop.permute.xlu0 %269 }
  0xbf   :  { %v272_v33 = vmul.f32 %v270_v32, %v2102_v31 }
  0xc1   :  { %274 = vrot.lane.b32.xlu1 %v272_v33, %s1967_s16 }
 0x115   :  { %v148_v35 = vpop.f32.mrb[0].mxu0 }
 0x116   :  { %v2111_v36 = vadd.f32 %v1484_v34, %v148_v35  ;;  %v1580_v37 = vpop.f32.mrb[1].mxu0 }
 0x118   :  { %1590 = vmatmul.mubr.msk.f32.vlgmr.msra.gmra.mrb[0].mxu1 %vm78_vm1, %v2111_v36 }
 0x119   :  { %1700 = vmatpush3.bf16.msra.mxu1 %v2077_v15  ;;  %1611 = vmatprep.mubr.msk.f32.mxu1 %vm1964_vm0, %v1965_v3 }
 0x11a   :  { %1701 = vmatprep.subr.bf16.mxu1 %v1962_v1 }
 0x11d   :  { %1703 = vmatpush3.bf16.msra.mxu1 %v2086_v18 }
 0x11e   :  { %1710 = vmatprep.subr.bf16.mxu1 %v1962_v1 }
 0x12e   :  { %v265_v42 = vpop.permute.xlu1 %264  ;;  %v285_v46 = vpop.permute.xlu0 %284 }
 0x12f   :  { %v267_v44 = vadd.f32 %v265_v42, %v2111_v36 }
 0x133   :  { %v275_v43 = vpop.permute.xlu1 %274 }
 0x134   :  { %v277_v45 = vadd.f32 %v275_v43, %v267_v44 }
 0x136   :  { %v287_v47 = vadd.f32 %v285_v46, %v277_v45 }
 0x1eb   :  { %v249_v39 = vpop.f32.mrb[0].mxu1 }
 0x1ec   :  { %v250_v40 = vadd.f32 %v2124_v38, %v249_v39  ;;  %v1591_v41 = vpop.f32.mrb[1].mxu1 }
 0x1ee   :  { %299 = vrot.lane.b32.xlu0 %v250_v40, %s1968_s19  ;;  %289 = vrot.lane.b32.xlu1 %v250_v40, %s1969_s20 }
 0x260   :  { %v290_v48 = vpop.permute.xlu1 %289  ;;  %v300_v54 = vpop.permute.xlu0 %299 }
 0x261   :  { %v292_v49 = vadd.f32 %v290_v48, %v287_v47 }
 0x263   :  { %v1489_v50 = vmul.f32 -1.442695, %v292_v49 }
 0x265   :  { %1782 = vpow2.f32 %v1489_v50 }
 0x26f   :  { %v1783_v51 = vpop.eup %1782 }
 0x270   :  { %v296_v52 = vadd.f32 1.0, %v1783_v51 }
 0x272   :  { %1784 = vrcp.f32 %v296_v52 }
 0x27c   :  { %v1785_v53 = vpop.eup %1784 }
 0x27d   :  { %v302_v55 = vmul.f32 %v1785_v53, %v300_v54  ;;  %v309_v60 = vsub.f32 1.0, %v1785_v53 }
 0x27f   :  { %304 = vrot.lane.b32.xlu1 %v302_v55, %s1970_s5 }
 0x283   :  { %315 = vrot.lane.b32.xlu1 %v2111_v36, %s1970_s5 }
 0x2f1   :  { %v305_v56 = vpop.permute.xlu1 %304 }
 0x2f2   :  { %v307_v57 = vadd.f32 %v305_v56, %v287_v47 }
 0x2f4   :  { %1786 = vtanh.f32 %v307_v57 }
 0x2f5   :  { %v316_v59 = vpop.permute.xlu1 %315 }
 0x2f6   :  { %v318_v62 = vmul.f32 %v1785_v53, %v316_v59 }
 0x2fe   :  { %v1787_v58 = vpop.eup %1786 }
 0x2ff   :  { %311 = vrot.lane.b32.xlu0 %v1787_v58, %s1971_s21 }
 0x371   :  { %v312_v61 = vpop.permute.xlu0 %311 }
 0x372   :  { %v314_v63 = vmul.f32 %v312_v61, %v309_v60 }
 0x374   :  { %v319_v4 = vadd.f32 %v318_v62, %v314_v63 }
 0x376   :  { %321 = vrot.lane.b32.xlu0 %v319_v4, %s1970_s5 }
 0x3e8   :  { %v322_v5 = vpop.permute.xlu0 %321 }
 0x3e9   :  { %1601 = vmatmul.mubr.msk.f32.vlgmr.msra.gmra.mrb[2].mxu0 %vm78_vm1, %v322_v5 }
 0x3ea   :  { %1706 = vmatpush3.bf16.msra.mxu0 %v2077_v15  ;;  %1622 = vmatprep.mubr.msk.f32.mxu0 %vm1964_vm0, %v1965_v3 }
 0x3eb   :  { %1707 = vmatprep.subr.bf16.mxu0 %v1962_v1 }
 0x3ee   :  { %1709 = vmatpush3.bf16.msra.mxu0 %v2086_v18 }
 0x3ef   :  { %1716 = vmatprep.subr.bf16.mxu0 %v1962_v1 }
 0x4bc   :  { %v391_v6 = vpop.f32.mrb[2].mxu0 }
 0x4bd   :  { %v2143_v7 = vadd.f32 %v2124_v38, %v391_v6  ;;  %v1602_v8 = vpop.f32.mrb[3].mxu0 }
 0x4bf   :  { %v1491_v9 = vmul.f32 -1.442695, %v2143_v7  ;;  %418 = vperm.xlu0 %1765, %v2143_v7  }
 0x4c1   :  { %1788 = vpow2.f32 %v1491_v9 }
 0x4c3   :  { %1769 = vset.pattern.permute.xlu0 %v1961_v0 }
 0x4cb   :  { %v1789_v10 = vpop.eup %1788 }
 0x4cc   :  { %v398_v12 = vadd.f32 1.0, %v1789_v10 }
 0x4ce   :  { %1790 = vrcp.f32 %v398_v12 }
 0x4d8   :  { %v2148_v13 = vpop.eup %1790 }
 0x4d9   :  { %407 = vperm.xlu1 %1767, %v2148_v13   ;;  %vm402_vm2 = vcmp.gt.f32.partialorder %v2148_v13, 0.5 }
 0x4da   :  { %v1492_v14 = vsel %vm402_vm2, 1.0, %v1965_v3 }
 0x4dd   :  { %1768 = vset.pattern.permute.xlu1 %v1963_v2 }
 0x4de   :  { %429 = vperm.xlu1 %1768, %v1492_v14  }
 0x4e2   :  { %1770 = vset.pattern.permute.xlu1 %v1966_v11 }
 0x53e   :  { %v419_v16 = vpop.permute.xlu0 %418 }
 0x53f   :  { %v421_v17 = vmul.f32 %v419_v16, %v2102_v31 }
 0x541   :  { %423 = vrot.lane.b32.xlu1 %v421_v17, %s1967_s16 }
 0x545   :  { %438 = vrot.lane.b32.xlu1 %v2143_v7, %s1969_s20 }
 0x558   :  { %v408_v20 = vpop.permute.xlu1 %407 }
 0x559   :  { %v410_v21 = vmul.f32 %v408_v20, %v2096_v24 }
 0x55b   :  { %412 = vrot.lane.b32.xlu0 %v410_v21, %s1967_s16 }
 0x55d   :  { %v430_v22 = vpop.permute.xlu1 %429 }
 0x55e   :  { %v432_v23 = vmul.f32 %v430_v22, %v2098_v25 }
 0x560   :  { %434 = vrot.lane.b32.xlu0 %v432_v23, %s1967_s16 }
 0x564   :  { %448 = vrot.lane.b32.xlu0 %v2143_v7, %s1968_s19 }
 0x5b3   :  { %v424_v27 = vpop.permute.xlu1 %423 }
 0x5b7   :  { %v439_v33 = vpop.permute.xlu1 %438 }
 0x5cd   :  { %v413_v26 = vpop.permute.xlu0 %412 }
 0x5ce   :  { %v415_v28 = vadd.f32 %v413_v26, %v2111_v36 }
 0x5d0   :  { %v426_v29 = vadd.f32 %v424_v27, %v415_v28 }
 0x5d2   :  { %v435_v30 = vpop.permute.xlu0 %434 }
 0x5d3   :  { %v437_v32 = vadd.f32 %v435_v30, %v426_v29 }
 0x5d5   :  { %v441_v34 = vadd.f32 %v439_v33, %v437_v32 }
 0x5d6   :  { %v449_v41 = vpop.permute.xlu0 %448 }
 0x5d7   :  { %v1493_v35 = vmul.f32 -1.442695, %v441_v34 }
 0x5d9   :  { %1792 = vpow2.f32 %v1493_v35 }
 0x5e3   :  { %v1793_v37 = vpop.eup %1792 }
 0x5e4   :  { %v445_v39 = vadd.f32 1.0, %v1793_v37 }
 0x5e6   :  { %1794 = vrcp.f32 %v445_v39 }
 0x5f0   :  { %v1795_v40 = vpop.eup %1794 }
 0x5f1   :  { %v451_v42 = vmul.f32 %v1795_v40, %v449_v41  ;;  %v458_v46 = vsub.f32 1.0, %v1795_v40  ;;  %v464_v48 = vmul.f32 %v1795_v40, %v319_v4 }
 0x5f3   :  { %453 = vrot.lane.b32.xlu1 %v451_v42, %s1970_s5 }
 0x665   :  { %v454_v43 = vpop.permute.xlu1 %453 }
 0x666   :  { %v456_v44 = vadd.f32 %v454_v43, %v437_v32 }
 0x668   :  { %1796 = vtanh.f32 %v456_v44 }
 0x672   :  { %v1797_v45 = vpop.eup %1796 }
 0x673   :  { %460 = vrot.lane.b32.xlu0 %v1797_v45, %s1971_s21 }
 0x6e5   :  { %v461_v47 = vpop.permute.xlu0 %460 }
 0x6e6   :  { %v463_v49 = vmul.f32 %v461_v47, %v458_v46 }
 0x6e8   :  { %v465_v50 = vadd.f32 %v464_v48, %v463_v49 }
 0x6ea   :  { %467 = vrot.lane.b32.xlu1 %v465_v50, %s1970_s5 }
 0x75c   :  { %v468_v51 = vpop.permute.xlu1 %467 }
 0x75d   :  { %1612 = vmatmul.mubr.msk.f32.vlgmr.msra.gmra.mrb[2].mxu1 %vm78_vm1, %v468_v51 }
 0x75e   :  { %1712 = vmatpush3.bf16.msra.mxu1 %v2077_v15  ;;  %1633 = vmatprep.mubr.msk.f32.mxu1 %vm1964_vm0, %v1965_v3 }
 0x75f   :  { %1713 = vmatprep.subr.bf16.mxu1 %v1962_v1 }
 0x762   :  { %1715 = vmatpush3.bf16.msra.mxu1 %v2086_v18 }
 0x763   :  { %1722 = vmatprep.subr.bf16.mxu1 %v1962_v1 }
 0x830   :  { %v537_v52 = vpop.f32.mrb[2].mxu1 }
 0x831   :  { %v2177_v53 = vadd.f32 %v2124_v38, %v537_v52  ;;  %v1613_v54 = vpop.f32.mrb[3].mxu1 }
 0x833   :  { %v1495_v55 = vmul.f32 -1.442695, %v2177_v53  ;;  %564 = vperm.xlu1 %1770, %v2177_v53  }
 0x835   :  { %1798 = vpow2.f32 %v1495_v55 }
 0x837   :  { %1771 = vset.pattern.permute.xlu1 %v1963_v2 }
 0x83f   :  { %v1799_v56 = vpop.eup %1798 }
 0x840   :  { %v544_v57 = vadd.f32 1.0, %v1799_v56 }
 0x842   :  { %1800 = vrcp.f32 %v544_v57 }
 0x84c   :  { %v2182_v58 = vpop.eup %1800 }
 0x84d   :  { %553 = vperm.xlu0 %1769, %v2182_v58   ;;  %vm548_vm3 = vcmp.gt.f32.partialorder %v2182_v58, 0.5 }
 0x84e   :  { %v1496_v59 = vsel %vm548_vm3, 1.0, %v1965_v3 }
 0x84f   :  { %575 = vperm.xlu1 %1771, %v1496_v59  }
 0x853   :  { %1772 = vset.pattern.permute.xlu1 %v1966_v11 }
 0x8b2   :  { %v565_v60 = vpop.permute.xlu1 %564 }
 0x8b3   :  { %v567_v61 = vmul.f32 %v565_v60, %v2102_v31 }
 0x8b5   :  { %569 = vrot.lane.b32.xlu1 %v567_v61, %s1967_s16 }
 0x8b9   :  { %584 = vrot.lane.b32.xlu1 %v2177_v53, %s1969_s20 }
 0x8cc   :  { %v554_v62 = vpop.permute.xlu0 %553 }
 0x8cd   :  { %v556_v63 = vmul.f32 %v554_v62, %v2096_v24 }
 0x8ce   :  { %v576_v4 = vpop.permute.xlu1 %575 }
 0x8cf   :  { %558 = vrot.lane.b32.xlu0 %v556_v63, %s1967_s16  ;;  %v578_v5 = vmul.f32 %v576_v4, %v2098_v25 }
 0x8d3   :  { %580 = vrot.lane.b32.xlu0 %v578_v5, %s1967_s16 }
 0x8d7   :  { %594 = vrot.lane.b32.xlu0 %v2177_v53, %s1968_s19 }
 0x927   :  { %v570_v6 = vpop.permute.xlu1 %569 }
 0x92b   :  { %v585_v16 = vpop.permute.xlu1 %584 }
 0x941   :  { %v559_v8 = vpop.permute.xlu0 %558 }
 0x942   :  { %v561_v9 = vadd.f32 %v559_v8, %v2111_v36 }
 0x944   :  { %v572_v10 = vadd.f32 %v570_v6, %v561_v9 }
 0x945   :  { %v581_v12 = vpop.permute.xlu0 %580 }
 0x946   :  { %v583_v14 = vadd.f32 %v581_v12, %v572_v10 }
 0x948   :  { %v587_v17 = vadd.f32 %v585_v16, %v583_v14 }
 0x949   :  { %v595_v26 = vpop.permute.xlu0 %594 }
 0x94a   :  { %v1497_v20 = vmul.f32 -1.442695, %v587_v17 }
 0x94c   :  { %1802 = vpow2.f32 %v1497_v20 }
 0x956   :  { %v1803_v21 = vpop.eup %1802 }
 0x957   :  { %v591_v22 = vadd.f32 1.0, %v1803_v21 }
 0x959   :  { %1804 = vrcp.f32 %v591_v22 }
 0x963   :  { %v1805_v23 = vpop.eup %1804 }
 0x964   :  { %v597_v27 = vmul.f32 %v1805_v23, %v595_v26  ;;  %v604_v32 = vsub.f32 1.0, %v1805_v23  ;;  %v610_v34 = vmul.f32 %v1805_v23, %v465_v50 }
 0x966   :  { %599 = vrot.lane.b32.xlu1 %v597_v27, %s1970_s5 }
 0x9d8   :  { %v600_v28 = vpop.permute.xlu1 %599 }
 0x9d9   :  { %v602_v29 = vadd.f32 %v600_v28, %v583_v14 }
 0x9db   :  { %1806 = vtanh.f32 %v602_v29 }
 0x9e5   :  { %v1807_v30 = vpop.eup %1806 }
 0x9e6   :  { %606 = vrot.lane.b32.xlu0 %v1807_v30, %s1971_s21 }
 0xa58   :  { %v607_v33 = vpop.permute.xlu0 %606 }
 0xa59   :  { %v609_v35 = vmul.f32 %v607_v33, %v604_v32 }
 0xa5b   :  { %v611_v37 = vadd.f32 %v610_v34, %v609_v35 }
 0xa5d   :  { %613 = vrot.lane.b32.xlu1 %v611_v37, %s1970_s5 }
 0xacf   :  { %v614_v39 = vpop.permute.xlu1 %613 }
 0xad0   :  { %1623 = vmatmul.mubr.msk.f32.vlgmr.msra.gmra.mrb[4].mxu0 %vm78_vm1, %v614_v39 }
 0xad1   :  { %1718 = vmatpush3.bf16.msra.mxu0 %v2077_v15  ;;  %1644 = vmatprep.mubr.msk.f32.mxu0 %vm1964_vm0, %v1965_v3 }
 0xad2   :  { %1719 = vmatprep.subr.bf16.mxu0 %v1962_v1 }
 0xad5   :  { %1721 = vmatpush3.bf16.msra.mxu0 %v2086_v18 }
 0xad6   :  { %1728 = vmatprep.subr.bf16.mxu0 %v1962_v1 }
 0xba3   :  { %v683_v40 = vpop.f32.mrb[4].mxu0 }
 0xba4   :  { %v2210_v41 = vadd.f32 %v2124_v38, %v683_v40  ;;  %v1624_v42 = vpop.f32.mrb[5].mxu0 }
 0xba6   :  { %v1499_v43 = vmul.f32 -1.442695, %v2210_v41  ;;  %710 = vperm.xlu1 %1772, %v2210_v41  }
 0xba8   :  { %1808 = vpow2.f32 %v1499_v43 }
 0xbb2   :  { %v1809_v44 = vpop.eup %1808 }
 0xbb3   :  { %v690_v45 = vadd.f32 1.0, %v1809_v44 }
 0xbb5   :  { %1810 = vrcp.f32 %v690_v45 }
 0xbbf   :  { %v2214_v46 = vpop.eup %1810 }
 0xbc0   :  { %699 = vperm.xlu0 %1769, %v2214_v46   ;;  %vm694_vm4 = vcmp.gt.f32.partialorder %v2214_v46, 0.5 }
 0xbc1   :  { %v1500_v47 = vsel %vm694_vm4, 1.0, %v1965_v3 }
 0xbc4   :  { %1773 = vset.pattern.permute.xlu0 %v1963_v2 }
 0xbc5   :  { %721 = vperm.xlu0 %1773, %v1500_v47  }
 0xbc9   :  { %1774 = vset.pattern.permute.xlu0 %v1961_v0 }
 0xc25   :  { %v711_v50 = vpop.permute.xlu1 %710 }
 0xc26   :  { %v713_v51 = vmul.f32 %v711_v50, %v2102_v31 }
 0xc3f   :  { %v700_v48 = vpop.permute.xlu0 %699 }
 0xc40   :  { %v702_v49 = vmul.f32 %v700_v48, %v2096_v24 }
 0xc42   :  { %704 = vrot.lane.b32.xlu1 %v702_v49, %s1967_s16 }
 0xc44   :  { %v722_v52 = vpop.permute.xlu0 %721 }
 0xc45   :  { %v724_v54 = vmul.f32 %v722_v52, %v2098_v25 }
 0xc46   :  { %715 = vrot.lane.b32.xlu1 %v713_v51, %s1967_s16 }
 0xc47   :  { %726 = vrot.lane.b32.xlu0 %v724_v54, %s1967_s16 }
 0xc4a   :  { %730 = vrot.lane.b32.xlu1 %v2210_v41, %s1969_s20 }
 0xc4b   :  { %740 = vrot.lane.b32.xlu0 %v2210_v41, %s1968_s19 }
 0xcb4   :  { %v705_v55 = vpop.permute.xlu1 %704 }
 0xcb5   :  { %v707_v56 = vadd.f32 %v705_v55, %v2111_v36 }
 0xcb8   :  { %v716_v57 = vpop.permute.xlu1 %715 }
 0xcb9   :  { %v718_v59 = vadd.f32 %v716_v57, %v707_v56  ;;  %v727_v60 = vpop.permute.xlu0 %726 }
 0xcbb   :  { %v729_v61 = vadd.f32 %v727_v60, %v718_v59 }
 0xcbc   :  { %v731_v62 = vpop.permute.xlu1 %730 }
 0xcbd   :  { %v733_v63 = vadd.f32 %v731_v62, %v729_v61  ;;  %v741_v9 = vpop.permute.xlu0 %740 }
 0xcbf   :  { %v1501_v4 = vmul.f32 -1.442695, %v733_v63 }
 0xcc1   :  { %1812 = vpow2.f32 %v1501_v4 }
 0xccb   :  { %v1813_v5 = vpop.eup %1812 }
 0xccc   :  { %v737_v6 = vadd.f32 1.0, %v1813_v5 }
 0xcce   :  { %1814 = vrcp.f32 %v737_v6 }
 0xcd8   :  { %v1815_v8 = vpop.eup %1814 }
 0xcd9   :  { %v743_v10 = vmul.f32 %v1815_v8, %v741_v9  ;;  %v750_v17 = vsub.f32 1.0, %v1815_v8  ;;  %v756_v21 = vmul.f32 %v1815_v8, %v611_v37 }
 0xcdb   :  { %745 = vrot.lane.b32.xlu1 %v743_v10, %s1970_s5 }
 0xd4d   :  { %v746_v12 = vpop.permute.xlu1 %745 }
 0xd4e   :  { %v748_v14 = vadd.f32 %v746_v12, %v729_v61 }
 0xd50   :  { %1816 = vtanh.f32 %v748_v14 }
 0xd5a   :  { %v1817_v16 = vpop.eup %1816 }
 0xd5b   :  { %752 = vrot.lane.b32.xlu0 %v1817_v16, %s1971_s21 }
 0xdcd   :  { %v753_v20 = vpop.permute.xlu0 %752 }
 0xdce   :  { %v755_v22 = vmul.f32 %v753_v20, %v750_v17 }
 0xdd0   :  { %v757_v23 = vadd.f32 %v756_v21, %v755_v22 }
 0xdd2   :  { %759 = vrot.lane.b32.xlu1 %v757_v23, %s1970_s5 }
 0xe44   :  { %v760_v26 = vpop.permute.xlu1 %759 }
 0xe45   :  { %1634 = vmatmul.mubr.msk.f32.vlgmr.msra.gmra.mrb[4].mxu1 %vm78_vm1, %v760_v26 }
 0xe46   :  { %1724 = vmatpush3.bf16.msra.mxu1 %v2077_v15  ;;  %1655 = vmatprep.mubr.msk.f32.mxu1 %vm1964_vm0, %v1965_v3 }
 0xe47   :  { %1725 = vmatprep.subr.bf16.mxu1 %v1962_v1 }
 0xe4a   :  { %1727 = vmatpush3.bf16.msra.mxu1 %v2086_v18 }
 0xe4b   :  { %1734 = vmatprep.subr.bf16.mxu1 %v1962_v1 }
 0xf18   :  { %v829_v27 = vpop.f32.mrb[4].mxu1 }
 0xf19   :  { %v2243_v28 = vadd.f32 %v2124_v38, %v829_v27  ;;  %v1635_v29 = vpop.f32.mrb[5].mxu1 }
 0xf1b   :  { %v1503_v30 = vmul.f32 -1.442695, %v2243_v28  ;;  %856 = vperm.xlu1 %1772, %v2243_v28  }
 0xf1d   :  { %1818 = vpow2.f32 %v1503_v30 }
 0xf1f   :  { %1775 = vset.pattern.permute.xlu1 %v1963_v2 }
 0xf27   :  { %v1819_v32 = vpop.eup %1818 }
 0xf28   :  { %v836_v33 = vadd.f32 1.0, %v1819_v32 }
 0xf2a   :  { %1820 = vrcp.f32 %v836_v33 }
 0xf34   :  { %v2248_v34 = vpop.eup %1820 }
 0xf35   :  { %845 = vperm.xlu0 %1774, %v2248_v34   ;;  %vm840_vm5 = vcmp.gt.f32.partialorder %v2248_v34, 0.5 }
 0xf36   :  { %v1504_v35 = vsel %vm840_vm5, 1.0, %v1965_v3 }
 0xf37   :  { %867 = vperm.xlu1 %1775, %v1504_v35  }
 0xf3b   :  { %1776 = vset.pattern.permute.xlu1 %v1966_v11 }
 0xf9a   :  { %v857_v37 = vpop.permute.xlu1 %856 }
 0xf9b   :  { %v859_v39 = vmul.f32 %v857_v37, %v2102_v31 }
 0xf9d   :  { %861 = vrot.lane.b32.xlu1 %v859_v39, %s1967_s16 }
 0xfa1   :  { %876 = vrot.lane.b32.xlu1 %v2243_v28, %s1969_s20 }
 0xfb4   :  { %v846_v40 = vpop.permute.xlu0 %845 }
 0xfb5   :  { %v848_v42 = vmul.f32 %v846_v40, %v2096_v24 }
 0xfb6   :  { %v868_v43 = vpop.permute.xlu1 %867 }
 0xfb7   :  { %850 = vrot.lane.b32.xlu0 %v848_v42, %s1967_s16  ;;  %v870_v44 = vmul.f32 %v868_v43, %v2098_v25 }
 0xfbb   :  { %872 = vrot.lane.b32.xlu0 %v870_v44, %s1967_s16 }
 0xfbf   :  { %886 = vrot.lane.b32.xlu0 %v2243_v28, %s1968_s19 }
0x100f   :  { %v862_v45 = vpop.permute.xlu1 %861 }
0x1013   :  { %v877_v52 = vpop.permute.xlu1 %876 }
0x1029   :  { %v851_v47 = vpop.permute.xlu0 %850 }
0x102a   :  { %v853_v48 = vadd.f32 %v851_v47, %v2111_v36 }
0x102c   :  { %v864_v49 = vadd.f32 %v862_v45, %v853_v48 }
0x102d   :  { %v873_v50 = vpop.permute.xlu0 %872 }
0x102e   :  { %v875_v51 = vadd.f32 %v873_v50, %v864_v49 }
0x1030   :  { %v879_v54 = vadd.f32 %v877_v52, %v875_v51 }
0x1031   :  { %v887_v60 = vpop.permute.xlu0 %886 }
0x1032   :  { %v1505_v55 = vmul.f32 -1.442695, %v879_v54 }
0x1034   :  { %1822 = vpow2.f32 %v1505_v55 }
0x103e   :  { %v1823_v56 = vpop.eup %1822 }
0x103f   :  { %v883_v57 = vadd.f32 1.0, %v1823_v56 }
0x1041   :  { %1824 = vrcp.f32 %v883_v57 }
0x104b   :  { %v1825_v59 = vpop.eup %1824 }
0x104c   :  { %v889_v61 = vmul.f32 %v1825_v59, %v887_v60  ;;  %v896_v5 = vsub.f32 1.0, %v1825_v59  ;;  %v902_v8 = vmul.f32 %v1825_v59, %v757_v23 }
0x104e   :  { %891 = vrot.lane.b32.xlu1 %v889_v61, %s1970_s5 }
0x10c0   :  { %v892_v62 = vpop.permute.xlu1 %891 }
0x10c1   :  { %v894_v63 = vadd.f32 %v892_v62, %v875_v51 }
0x10c3   :  { %1826 = vtanh.f32 %v894_v63 }
0x10cd   :  { %v1827_v4 = vpop.eup %1826 }
0x10ce   :  { %898 = vrot.lane.b32.xlu0 %v1827_v4, %s1971_s21 }
0x1140   :  { %v899_v6 = vpop.permute.xlu0 %898 }
0x1141   :  { %v901_v9 = vmul.f32 %v899_v6, %v896_v5 }
0x1143   :  { %v903_v10 = vadd.f32 %v902_v8, %v901_v9 }
0x1145   :  { %905 = vrot.lane.b32.xlu1 %v903_v10, %s1970_s5 }
0x11b7   :  { %v906_v12 = vpop.permute.xlu1 %905 }
0x11b8   :  { %1645 = vmatmul.mubr.msk.f32.vlgmr.msra.gmra.mrb[6].mxu0 %vm78_vm1, %v906_v12 }
0x11b9   :  { %1730 = vmatpush3.bf16.msra.mxu0 %v2077_v15  ;;  %1666 = vmatprep.mubr.msk.f32.mxu0 %vm1964_vm0, %v1965_v3 }
0x11ba   :  { %1731 = vmatprep.subr.bf16.mxu0 %v1962_v1 }
0x11bd   :  { %1733 = vmatpush3.bf16.msra.mxu0 %v2086_v18 }
0x128b   :  { %v975_v14 = vpop.f32.mrb[6].mxu0 }
0x128c   :  { %v2275_v16 = vadd.f32 %v2124_v38, %v975_v14  ;;  %v1646_v17 = vpop.f32.mrb[7].mxu0 }
0x128e   :  { %v1507_v20 = vmul.f32 -1.442695, %v2275_v16  ;;  %1002 = vperm.xlu1 %1776, %v2275_v16  }
0x1290   :  { %1828 = vpow2.f32 %v1507_v20 }
0x129a   :  { %v1829_v21 = vpop.eup %1828 }
0x129b   :  { %v982_v22 = vadd.f32 1.0, %v1829_v21 }
0x129d   :  { %1830 = vrcp.f32 %v982_v22 }
0x12a7   :  { %v2279_v23 = vpop.eup %1830 }
0x12a8   :  { %991 = vperm.xlu0 %1774, %v2279_v23   ;;  %vm986_vm6 = vcmp.gt.f32.partialorder %v2279_v23, 0.5 }
0x12a9   :  { %v1508_v26 = vsel %vm986_vm6, 1.0, %v1965_v3 }
0x12ac   :  { %1777 = vset.pattern.permute.xlu0 %v1963_v2 }
0x12ad   :  { %1013 = vperm.xlu0 %1777, %v1508_v26  }
0x12b1   :  { %1778 = vset.pattern.permute.xlu0 %v1961_v0 }
0x130d   :  { %v1003_v30 = vpop.permute.xlu1 %1002 }
0x130e   :  { %v1005_v32 = vmul.f32 %v1003_v30, %v2102_v31 }
0x1327   :  { %v992_v27 = vpop.permute.xlu0 %991 }
0x1328   :  { %v994_v29 = vmul.f32 %v992_v27, %v2096_v24 }
0x132a   :  { %996 = vrot.lane.b32.xlu1 %v994_v29, %s1967_s16 }
0x132c   :  { %v1014_v33 = vpop.permute.xlu0 %1013 }
0x132d   :  { %v1016_v35 = vmul.f32 %v1014_v33, %v2098_v25 }
0x132e   :  { %1007 = vrot.lane.b32.xlu1 %v1005_v32, %s1967_s16 }
0x132f   :  { %1018 = vrot.lane.b32.xlu0 %v1016_v35, %s1967_s16 }
0x1332   :  { %1022 = vrot.lane.b32.xlu1 %v2275_v16, %s1969_s20 }
0x1333   :  { %1032 = vrot.lane.b32.xlu0 %v2275_v16, %s1968_s19 }
0x139c   :  { %v997_v0 = vpop.permute.xlu1 %996 }
0x139d   :  { %v999_v37 = vadd.f32 %v997_v0, %v2111_v36 }
0x13a0   :  { %v1008_v39 = vpop.permute.xlu1 %1007 }
0x13a1   :  { %v1010_v40 = vadd.f32 %v1008_v39, %v999_v37  ;;  %v1019_v42 = vpop.permute.xlu0 %1018 }
0x13a3   :  { %v1021_v43 = vadd.f32 %v1019_v42, %v1010_v40 }
0x13a4   :  { %v1023_v44 = vpop.permute.xlu1 %1022 }
0x13a5   :  { %v1025_v45 = vadd.f32 %v1023_v44, %v1021_v43  ;;  %v1033_v51 = vpop.permute.xlu0 %1032 }
0x13a7   :  { %v1509_v47 = vmul.f32 -1.442695, %v1025_v45 }
0x13a9   :  { %1832 = vpow2.f32 %v1509_v47 }
0x13b3   :  { %v1833_v48 = vpop.eup %1832 }
0x13b4   :  { %v1029_v49 = vadd.f32 1.0, %v1833_v48 }
0x13b6   :  { %1834 = vrcp.f32 %v1029_v49 }
0x13c0   :  { %v1835_v50 = vpop.eup %1834 }
0x13c1   :  { %v1035_v52 = vmul.f32 %v1835_v50, %v1033_v51  ;;  %v1042_v57 = vsub.f32 1.0, %v1835_v50  ;;  %v1048_v60 = vmul.f32 %v1835_v50, %v903_v10 }
0x13c3   :  { %1037 = vrot.lane.b32.xlu1 %v1035_v52, %s1970_s5 }
0x1435   :  { %v1038_v54 = vpop.permute.xlu1 %1037 }
0x1436   :  { %v1040_v55 = vadd.f32 %v1038_v54, %v1021_v43 }
0x1438   :  { %1836 = vtanh.f32 %v1040_v55 }
0x1442   :  { %v1837_v56 = vpop.eup %1836 }
0x1443   :  { %1044 = vrot.lane.b32.xlu0 %v1837_v56, %s1971_s21 }
0x14b5   :  { %v1045_v59 = vpop.permute.xlu0 %1044 }
0x14b6   :  { %v1047_v61 = vmul.f32 %v1045_v59, %v1042_v57 }
0x14b8   :  { %v1049_v62 = vadd.f32 %v1048_v60, %v1047_v61 }
0x14ba   :  { %1051 = vrot.lane.b32.xlu1 %v1049_v62, %s1970_s5 }
0x152c   :  { %v1052_v63 = vpop.permute.xlu1 %1051 }
0x152d   :  { %1656 = vmatmul.mubr.msk.f32.vlgmr.msra.gmra.mrb[6].mxu1 %vm78_vm1, %v1052_v63 }
0x152e   :  { %1736 = vmatpush3.bf16.msra.mxu1 %v2077_v15  ;;  %1677 = vmatprep.mubr.msk.f32.mxu1 %vm1964_vm0, %v1965_v3  ;;  %vm1464_vm0 = vcmask 171008  }
0x152f   :  { %1737 = vmatprep.subr.bf16.mxu1 %v1962_v1 }
0x1532   :  { %1739 = vmatpush3.bf16.msra.mxu1 %v2086_v18 }
0x1600   :  { %v1121_v4 = vpop.f32.mrb[6].mxu1 }
0x1601   :  { %v2307_v5 = vadd.f32 %v2124_v38, %v1121_v4  ;;  %v1657_v6 = vpop.f32.mrb[7].mxu1 }
0x1603   :  { %v1511_v8 = vmul.f32 -1.442695, %v2307_v5  ;;  %1148 = vperm.xlu1 %1776, %v2307_v5  }
0x1605   :  { %1838 = vpow2.f32 %v1511_v8 }
0x1607   :  { %1779 = vset.pattern.permute.xlu1 %v1963_v2 }
0x160f   :  { %v1839_v15 = vpop.eup %1838 }
0x1610   :  { %v1128_v9 = vadd.f32 1.0, %v1839_v15 }
0x1612   :  { %1840 = vrcp.f32 %v1128_v9 }
0x161c   :  { %v2312_v10 = vpop.eup %1840 }
0x161d   :  { %1137 = vperm.xlu0 %1778, %v2312_v10   ;;  %vm1132_vm7 = vcmp.gt.f32.partialorder %v2312_v10, 0.5 }
0x161e   :  { %v1512_v1 = vsel %vm1132_vm7, 1.0, %v1965_v3 }
0x161f   :  { %1159 = vperm.xlu1 %1779, %v1512_v1  }
0x1623   :  { %1780 = vset.pattern.permute.xlu1 %v1966_v11 }
0x1682   :  { %v1149_v18 = vpop.permute.xlu1 %1148 }
0x1683   :  { %v1151_v12 = vmul.f32 %v1149_v18, %v2102_v31 }
0x1685   :  { %1153 = vrot.lane.b32.xlu1 %v1151_v12, %s1967_s16 }
0x1689   :  { %1168 = vrot.lane.b32.xlu1 %v2307_v5, %s1969_s20 }
0x169c   :  { %v1138_v14 = vpop.permute.xlu0 %1137 }
0x169d   :  { %v1140_v17 = vmul.f32 %v1138_v14, %v2096_v24 }
0x169e   :  { %v1160_v20 = vpop.permute.xlu1 %1159 }
0x169f   :  { %1142 = vrot.lane.b32.xlu0 %v1140_v17, %s1967_s16  ;;  %v1162_v21 = vmul.f32 %v1160_v20, %v2098_v25 }
0x16a3   :  { %1164 = vrot.lane.b32.xlu0 %v1162_v21, %s1967_s16 }
0x16a7   :  { %1178 = vrot.lane.b32.xlu0 %v2307_v5, %s1968_s19 }
0x16f7   :  { %v1154_v11 = vpop.permute.xlu1 %1153 }
0x16fb   :  { %v1169_v32 = vpop.permute.xlu1 %1168 }
0x1711   :  { %v1143_v22 = vpop.permute.xlu0 %1142 }
0x1712   :  { %v1145_v26 = vadd.f32 %v1143_v22, %v2111_v36 }
0x1714   :  { %v1156_v27 = vadd.f32 %v1154_v11, %v1145_v26 }
0x1715   :  { %v1165_v29 = vpop.permute.xlu0 %1164 }
0x1716   :  { %v1167_v30 = vadd.f32 %v1165_v29, %v1156_v27 }
0x1718   :  { %v1171_v33 = vadd.f32 %v1169_v32, %v1167_v30 }
0x1719   :  { %v1179_v40 = vpop.permute.xlu0 %1178 }
0x171a   :  { %v1513_v35 = vmul.f32 -1.442695, %v1171_v33 }
0x171c   :  { %1842 = vpow2.f32 %v1513_v35 }
0x1726   :  { %v1843_v0 = vpop.eup %1842 }
0x1727   :  { %v1175_v37 = vadd.f32 1.0, %v1843_v0 }
0x1729   :  { %1844 = vrcp.f32 %v1175_v37 }
0x1733   :  { %v1845_v39 = vpop.eup %1844 }
0x1734   :  { %v1181_v42 = vmul.f32 %v1845_v39, %v1179_v40  ;;  %v1188_v47 = vsub.f32 1.0, %v1845_v39  ;;  %v1194_v49 = vmul.f32 %v1845_v39, %v1049_v62 }
0x1736   :  { %1183 = vrot.lane.b32.xlu1 %v1181_v42, %s1970_s5 }
0x17a8   :  { %v1184_v43 = vpop.permute.xlu1 %1183 }
0x17a9   :  { %v1186_v44 = vadd.f32 %v1184_v43, %v1167_v30 }
0x17ab   :  { %1846 = vtanh.f32 %v1186_v44 }
0x17b5   :  { %v1847_v45 = vpop.eup %1846 }
0x17b6   :  { %1190 = vrot.lane.b32.xlu0 %v1847_v45, %s1971_s21 }
0x1828   :  { %v1191_v48 = vpop.permute.xlu0 %1190 }
0x1829   :  { %v1193_v50 = vmul.f32 %v1191_v48, %v1188_v47 }
0x182b   :  { %v2331_v51 = vadd.f32 %v1194_v49, %v1193_v50 }
0x182d   :  { %1197 = vrot.lane.b32.xlu1 %v2331_v51, %s1970_s5 }
0x189f   :  { %v1198_v52 = vpop.permute.xlu1 %1197 }
0x18a0   :  { %1667 = vmatmul.mubr.msk.f32.vlgmr.msra.gmra.mrb[8].mxu0 %vm78_vm1, %v1198_v52 }
0x1973   :  { %v1267_v54 = vpop.f32.mrb[8].mxu0 }
0x1974   :  { %v2337_v55 = vadd.f32 %v2124_v38, %v1267_v54  ;;  %v1668_v56 = vpop.f32.mrb[9].mxu0 }
0x1976   :  { %v1515_v57 = vmul.f32 -1.442695, %v2337_v55  ;;  %1294 = vperm.xlu1 %1780, %v2337_v55  }
0x1978   :  { %1848 = vpow2.f32 %v1515_v57 }
0x1982   :  { %v1849_v59 = vpop.eup %1848 }
0x1983   :  { %v1274_v60 = vadd.f32 1.0, %v1849_v59 }
0x1985   :  { %1850 = vrcp.f32 %v1274_v60 }
0x198f   :  { %v2341_v61 = vpop.eup %1850 }
0x1990   :  { %1283 = vperm.xlu0 %1778, %v2341_v61   ;;  %vm1278_vm8 = vcmp.gt.f32.partialorder %v2341_v61, 0.5 }
0x1991   :  { %v1516_v62 = vsel %vm1278_vm8, 1.0, %v1965_v3 }
0x1994   :  { %1781 = vset.pattern.permute.xlu0 %v1963_v2 }
0x1995   :  { %1305 = vperm.xlu0 %1781, %v1516_v62  }
0x19f5   :  { %v1295_v6 = vpop.permute.xlu1 %1294 }
0x19f6   :  { %v1297_v8 = vmul.f32 %v1295_v6, %v2102_v31 }
0x1a0f   :  { %v1284_v63 = vpop.permute.xlu0 %1283 }
0x1a10   :  { %v1286_v4 = vmul.f32 %v1284_v63, %v2096_v24 }
0x1a12   :  { %1288 = vrot.lane.b32.xlu1 %v1286_v4, %s1967_s16 }
0x1a14   :  { %v1306_v15 = vpop.permute.xlu0 %1305 }
0x1a15   :  { %v1308_v9 = vmul.f32 %v1306_v15, %v2098_v25 }
0x1a16   :  { %1299 = vrot.lane.b32.xlu1 %v1297_v8, %s1967_s16 }
0x1a17   :  { %1310 = vrot.lane.b32.xlu0 %v1308_v9, %s1967_s16 }
0x1a1a   :  { %1314 = vrot.lane.b32.xlu1 %v2337_v55, %s1969_s20 }
0x1a1b   :  { %1324 = vrot.lane.b32.xlu0 %v2337_v55, %s1968_s19 }
0x1a84   :  { %v1289_v2 = vpop.permute.xlu1 %1288 }
0x1a85   :  { %v1291_v3 = vadd.f32 %v1289_v2, %v2111_v36  ;;  %v171_v36 = vand.u32 127, %v158_v19 }
0x1a87   :  { %vm172_vm9 = vcmp.eq.s32.totalorder %v171_v36, 1 }
0x1a88   :  { %v1300_v24 = vpop.permute.xlu1 %1299  ;;  %v547_v30 = vsel %vm172_vm9, %v2177_v53, %v2182_v58  ;;  %v839_v32 = vsel %vm172_vm9, %v2243_v28, %v2248_v34  ;;  %v1131_v19 = vsel %vm172_vm9, %v2307_v5, %v2312_v10  ;;  %v693_v58 = vsel %vm172_vm9, %v2210_v41, %v2214_v46 }
0x1a89   :  { %v1302_v1 = vadd.f32 %v1300_v24, %v1291_v3  ;;  %v1311_v18 = vpop.permute.xlu0 %1310  ;;  %v985_v28 = vsel %vm172_vm9, %v2275_v16, %v2279_v23  ;;  %v1277_v34 = vsel %vm172_vm9, %v2337_v55, %v2341_v61  ;;  %v401_v45 = vsel %vm172_vm9, %v2143_v7, %v2148_v13 }
0x1a8b   :  { %v1313_v31 = vadd.f32 %v1311_v18, %v1302_v1 }
0x1a8c   :  { %v1315_v12 = vpop.permute.xlu1 %1314 }
0x1a8d   :  { %v1317_v14 = vadd.f32 %v1315_v12, %v1313_v31  ;;  %v1325_v11 = vpop.permute.xlu0 %1324 }
0x1a8f   :  { %v1517_v25 = vmul.f32 -1.442695, %v1317_v14 }
0x1a91   :  { %1852 = vpow2.f32 %v1517_v25 }
0x1a9b   :  { %v1853_v17 = vpop.eup %1852 }
0x1a9c   :  { %v1321_v20 = vadd.f32 1.0, %v1853_v17 }
0x1a9e   :  { %1854 = vrcp.f32 %v1321_v20 }
0x1aa8   :  { %v1855_v21 = vpop.eup %1854 }
0x1aa9   :  { %v1327_v22 = vmul.f32 %v1855_v21, %v1325_v11  ;;  %v1334_v33 = vsub.f32 1.0, %v1855_v21  ;;  %v1340_v0 = vmul.f32 %v1855_v21, %v2331_v51 }
0x1aab   :  { %1329 = vrot.lane.b32.xlu1 %v1327_v22, %s1970_s5 }
0x1b1d   :  { %v1330_v26 = vpop.permute.xlu1 %1329 }
0x1b1e   :  { %v1332_v27 = vadd.f32 %v1330_v26, %v1313_v31 }
0x1b20   :  { %1856 = vtanh.f32 %v1332_v27 }
0x1b2a   :  { %v1857_v29 = vpop.eup %1856 }
0x1b2b   :  { %1336 = vrot.lane.b32.xlu0 %v1857_v29, %s1971_s21 }
0x1b2f   :  { %1425 = vrot.lane.b32.xlu0 %v547_v30, %s1972_s22 }
0x1b33   :  { %1433 = vrot.lane.b32.xlu0 %v839_v32, %s1973_s23 }
0x1b37   :  { %1441 = vrot.lane.b32.xlu0 %v1131_v19, %s1974_s24 }
0x1b9d   :  { %v1337_v35 = vpop.permute.xlu0 %1336 }
0x1b9e   :  { %v1339_v37 = vmul.f32 %v1337_v35, %v1334_v33 }
0x1ba0   :  { %v1341_v53 = vadd.f32 %v1340_v0, %v1339_v37 }
0x1ba1   :  { %v1426_v43 = vpop.permute.xlu0 %1425 }
0x1ba2   :  { %1343 = vrot.lane.b32.xlu1 %v1341_v53, %s1970_s5  ;;  %v1453_v47 = vsel %vm1452_vm10, %v401_v45, %v1426_v43 }
0x1ba6   :  { %1429 = vrot.lane.b32.xlu1 %v693_v58, %s1975_s26 }
0x1baa   :  { %1437 = vrot.lane.b32.xlu1 %v985_v28, %s1976_s1 }
0x1bae   :  { %1445 = vrot.lane.b32.xlu1 %v1277_v34, %s1977_s25 }
0x1c14   :  { %v1344_v5 = vpop.permute.xlu1 %1343 }
0x1c15   :  { %1678 = vmatmul.mubr.msk.f32.vlgmr.msra.gmra.mrb[8].mxu1 %vm78_vm1, %v1344_v5  ;;  %vm1466_vm1 = vcmask 189440  }
0x1c18   :  { %v1430_v44 = vpop.permute.xlu1 %1429 }
0x1c19   :  { %v1455_v49 = vsel %vm1454_vm11, %v1453_v47, %v1430_v44 }
0x1c1c   :  { %v1438_v48 = vpop.permute.xlu1 %1437 }
0x1c20   :  { %v1446_v54 = vpop.permute.xlu1 %1445 }
0x1ce8   :  { %v1413_v10 = vpop.f32.mrb[8].mxu1 }
0x1ce9   :  { %v1414_v41 = vadd.f32 %v2124_v38, %v1413_v10  ;;  %v1679_v46 = vpop.f32.mrb[9].mxu1  ;;  %v1434_v38 = vpop.permute.xlu0 %1433 }
0x1cea   :  { %v1457_v50 = vsel %vm1456_vm12, %v1455_v49, %v1434_v38 }
0x1ceb   :  { %v1519_v39 = vmul.f32 -1.442695, %v1414_v41  ;;  %v1459_v52 = vsel %vm1458_vm13, %v1457_v50, %v1438_v48 }
0x1ced   :  { %1858 = vpow2.f32 %v1519_v39  ;;  %v1442_v51 = vpop.permute.xlu0 %1441 }
0x1cee   :  { %v1461_v55 = vsel %vm1460_vm14, %v1459_v52, %v1442_v51 }
0x1cef   :  { %v1463_v56 = vsel %vm1462_vm15, %v1461_v55, %v1446_v54 }
0x1cf7   :  { %v1859_v40 = vpop.eup %1858 }
0x1cf8   :  { %v1420_v42 = vadd.f32 1.0, %v1859_v40 }
0x1cfa   :  { %1860 = vrcp.f32 %v1420_v42 }
0x1d04   :  { %v1861_v16 = vpop.eup %1860 }
0x1d05   :  { %v1423_v23 = vsel %vm172_vm9, %v1414_v41, %v1861_v16 }
0x1d06   :  { %1449 = vrot.lane.b32.xlu0 %v1423_v23, %s1978_s27 }
0x1d78   :  { %v1450_v57 = vpop.permute.xlu0 %1449 }
0x1d79   :  { %v1465_v7 = vsel %vm1464_vm0, %v1463_v56, %v1450_v57 }
0x1d7a   :  { %1467 = vst.msk [vmem:[#allocation8] sm:$0x3] %vm1466_vm1, %v1465_v7 }
0x1d7b   :  { %1939 = shalt.err (!%p1936_p0)
}
0x1d7c   :  { %s1940_s10 = scalar_lea.hbm %s2406_s7, 32 }
0x1d7d   :  { %p1941_p1 = scmp.ne.s32.totalorder %s2406_s7, %s1940_s10  ;;  %p1944_p2 = scmp.lt.u32.totalorder %s1940_s10, %s2406_s7 }
0x1d7f   :  { %p1946_p3 = pnand %p1944_p2, %p1941_p1 }
0x1d81   :  { %1949 = shalt.err (!%p1946_p3)
}
0x1d82   :  { %1477 = dma.vmem_to_hbm [thread:$0]  %s1475_s29, 32, %s2406_s7, [#allocation4]  }
0x1d83   :  { %1954 = dma.done.wait [#allocation4], 32  }
0x1d84   :  { %1955 = vsyncadd [#allocation4], 4294967264 }
0x1d85   :  { %1481 = vsyncpa [#allocation3], 1 }
0x1d86   :  { %1482 = vsyncpa [#allocation6], 1 }
0x1d87   :  { %1483 = vsyncpa [#allocation4], 1 }

</bundles_post_ra>
